<compile_context>
chip_gen: v6e
topology: v6e:2x2x1
jax: 0.10.0
libtpu: 0.0.40
codegen_flags: <defaults>
</compile_context>

<pallas_src>
import functools

import jax
import jax.numpy as jnp
from jax import lax
from jax.experimental import pallas as pl
from jax.experimental.pallas import tpu as pltpu


def _round_up(x, m):
    return ((x + m - 1) // m) * m


# ---------------------------------------------------------------------------
# Kernel 1: ConvLayer  (im2col GEMM, transposed so the output is lane-dense)
# ---------------------------------------------------------------------------
def _conv_relu_kernel(wT_ref, b_ref, xT_ref, o_ref):
    w = wT_ref[...].astype(jnp.bfloat16)          # bf16 MXU inputs, f32 accumulate
    x = xT_ref[...].astype(jnp.bfloat16)
    z = jnp.dot(w, x, preferred_element_type=jnp.float32)
    o_ref[...] = jnp.maximum(z + b_ref[...], 0.0)


def conv_relu_gemm_t(wT, b, xT, tile_n=512):
    """ReLU(wT @ xT + b).  wT: [Cout, K], xT: [K, N] -> [Cout, N] (f32).

    The patch axis N (lanes) is zero-padded to a multiple of 128 so the grid
    always tiles (no silent whole-array fallback), then sliced back.
    """
    K = wT.shape[1]
    kpad = _round_up(K, 8)                        # zero-pad contraction (result unchanged)
    if kpad != K:
        wT = jnp.pad(wT, ((0, 0), (0, kpad - K)))
        xT = jnp.pad(xT, ((0, kpad - K), (0, 0)))
    Cout, K = wT.shape
    N = xT.shape[1]
    npad = _round_up(N, 128)
    if npad != N:
        xT = jnp.pad(xT, ((0, 0), (0, npad - N)))
    tn = 128
    for t in (tile_n, 256, 128):
        if npad % t == 0:
            tn = t
            break
    out = pl.pallas_call(
        _conv_relu_kernel,
        out_shape=jax.ShapeDtypeStruct((Cout, npad), jnp.float32),
        grid=(npad // tn,),
        in_specs=[
            pl.BlockSpec((Cout, K), lambda j: (0, 0)),
            pl.BlockSpec((Cout, 1), lambda j: (0, 0)),
            pl.BlockSpec((K, tn), lambda j: (0, j)),
        ],
        out_specs=pl.BlockSpec((Cout, tn), lambda j: (0, j)),
        compiler_params=pltpu.CompilerParams(dimension_semantics=("parallel",)),
    )(wT, b, xT)
    return out[:, :N]


# ---------------------------------------------------------------------------
# Kernel 2: PrimaryCaps conv as one transposed GEMM (runs exactly once)
# ---------------------------------------------------------------------------
def _primary_gemm_kernel(wT_ref, b_ref, xT_ref, o_ref):
    w = wT_ref[...].astype(jnp.bfloat16)          # bf16 MXU inputs, f32 accumulate
    x = xT_ref[...].astype(jnp.bfloat16)
    o_ref[...] = jnp.dot(w, x, preferred_element_type=jnp.float32) + b_ref[...]


def primary_caps_gemm(prim_wT, prim_b, p2t):
    """prim_wT: [I*Cp, K2] (rows capsule-major (i, c')), p2t: [K2, B*HW] -> [I*Cp, B*HW]."""
    NC = prim_wT.shape[0]
    M = p2t.shape[1]
    # TODO(synk): at real sizes add a K2 reduction grid axis + B*HW tiling with an
    # f32 accumulator scratch (v7x 64 MiB VMEM) and fold the k2*k2 im2col offsets
    # into the index_map instead of materializing the duplicated patch matrix.
    return pl.pallas_call(
        _primary_gemm_kernel,
        out_shape=jax.ShapeDtypeStruct((NC, M), jnp.float32),
    )(prim_wT, prim_b, p2t)


# ---------------------------------------------------------------------------
# Kernel 3: squash + DigitCaps dynamic routing (all classes) + Decoder, fused
# ---------------------------------------------------------------------------
def _routing_decoder_kernel(u_ref, wd_ref, w1_ref, b1_ref, w2_ref, b2_ref,
                            w3_ref, b3_ref, caps_ref, recon_ref, y_ref, *,
                            routing_iterations):
    B, I, P = u_ref.shape
    C = wd_ref.shape[0]
    O = wd_ref.shape[2]
    inv_P = 1.0 / float(P)
    eps = 1e-12   # guards 0/0 only; PyTorch reference has no eps (would NaN there too)

    # --- PrimaryCaps squash scale, computed ONCE (independent of class & i) ---
    # Reference squashes u [B, P, I] over its last (capsule-vector = I) axis.
    x0 = u_ref[:, 0, :]
    sqn = x0 * x0
    for i in range(1, I):                                    # static, I = 8
        xi = u_ref[:, i, :]
        sqn = sqn + xi * xi
    scale = (sqn / (1.0 + sqn)) * lax.rsqrt(sqn + eps)       # [B, P], exact divide

    v_list = []
    for c in range(C):                                       # static class loop
        # u_hat[b,o,p] = sum_i u_sq[b,i,p]*W[c,i,o,p] = scale[b,p]*sum_i u_raw[b,i,p]*W[c,i,o,p]
        # (squash scale hoisted out of the i-loop; rows read straight from the ref)
        u_hat = u_ref[:, 0, :][:, None, :] * wd_ref[c, 0][None, :, :]
        for i in range(1, I):                                # static; lax.fori_loop once I grows
            u_hat = u_hat + u_ref[:, i, :][:, None, :] * wd_ref[c, i][None, :, :]
        u_hat = u_hat * scale[:, None, :]                    # [B, O, P]

        # Dynamic routing: softmax over the primary-capsule axis P (= reference
        # softmax(b_ij, dim=2)); b_ij is constant over O so we keep it as [B, P].
        b_ij = jnp.zeros((B, P), jnp.float32)
        v = None
        for it in range(routing_iterations):                 # static, 3 iterations
            if it == 0:
                s = jnp.sum(u_hat, axis=-1) * inv_P          # b_ij==0 -> c_ij == 1/P
            else:
                m = jnp.max(b_ij, axis=-1, keepdims=True)
                e = jnp.exp(b_ij - m)
                c_ij = e * pl.reciprocal(jnp.sum(e, axis=-1, keepdims=True), approx=True)
                s = jnp.sum(c_ij[:, None, :] * u_hat, axis=-1)       # [B, O]
            sq = jnp.sum(s * s, axis=-1, keepdims=True)              # [B, 1]
            v = (sq / (1.0 + sq)) * s * lax.rsqrt(sq + eps)          # squash over O
            if it < routing_iterations - 1:
                b_ij = b_ij + jnp.sum(u_hat * v[:, :, None], axis=1)  # agreement [B, P]
        caps_ref[:, c, :] = v
        v_list.append(v)

    # --- Decoder: capsule-length argmax -> one-hot mask -> MLP -> sigmoid ----
    # Reference softmaxes lengths before .max(dim=1); softmax & sqrt are
    # monotonic, so comparing squared norms yields the identical argmax.
    norms = jnp.concatenate(
        [jnp.sum(v * v, axis=-1, keepdims=True) for v in v_list], axis=-1)   # [B, C]
    mx = jnp.max(norms, axis=-1, keepdims=True)
    col = lax.broadcasted_iota(jnp.int32, (B, C), 1)
    idx = jnp.min(jnp.where(norms >= mx, col, C), axis=-1, keepdims=True)    # first argmax
    y = (col == idx).astype(jnp.float32)
    y_ref[...] = y

    # Class-masked flatten folded into the first decoder layer:
    #   flat @ W1 == sum_c (v_c * y_c) @ W1[c*O:(c+1)*O]   (no 16-lane concats)
    h = jnp.zeros((B, w1_ref.shape[1]), jnp.float32)
    for c in range(C):
        h = h + jnp.dot(v_list[c] * y[:, c:c + 1], w1_ref[c * O:(c + 1) * O, :],
                        preferred_element_type=jnp.float32)
    h = jnp.maximum(h + b1_ref[...], 0.0)
    h = jnp.maximum(
        jnp.dot(h, w2_ref[...], preferred_element_type=jnp.float32) + b2_ref[...], 0.0)
    z = jnp.dot(h, w3_ref[...], preferred_element_type=jnp.float32) + b3_ref[...]
    recon_ref[...] = pl.reciprocal(1.0 + jnp.exp(-z), approx=True)   # sigmoid on EUP


def routing_and_decode(u_raw, digit_Wt, params, routing_iterations=3):
    """u_raw: [B, I, P] (pre-squash), digit_Wt: [C, I, O, P] -> (caps [B,C,O], recon, y)."""
    B = u_raw.shape[0]
    C, _, O, _ = digit_Wt.shape
    S2 = params["dec_w3"].shape[1]
    # TODO(synk): at real batch sizes add a batch-tile grid axis ("parallel") so the
    # working set stays bounded and v7x's two TensorCores split the batch.
    return pl.pallas_call(
        functools.partial(_routing_decoder_kernel,
                          routing_iterations=routing_iterations),
        out_shape=(jax.ShapeDtypeStruct((B, C, O), jnp.float32),
                   jax.ShapeDtypeStruct((B, S2), jnp.float32),
                   jax.ShapeDtypeStruct((B, C), jnp.float32)),
    )(u_raw, digit_Wt, params["dec_w1"], params["dec_b1"],
      params["dec_w2"], params["dec_b2"], params["dec_w3"], params["dec_b3"])


# ---------------------------------------------------------------------------
# Glue (im2col patch extraction / relayout) -- tiny XLA ops
# ---------------------------------------------------------------------------
def _im2col_T(x_cbhw, k, stride):
    """x: [C, B, H, W] -> patches^T [k*k*C (kh,kw,c order), B*Ho*Wo (b,oh,ow order)]."""
    C, B, H, W = x_cbhw.shape
    Ho = (H - k) // stride + 1
    Wo = (W - k) // stride + 1
    cols = [x_cbhw[:, :, kh:kh + stride * Ho:stride, kw:kw + stride * Wo:stride]
            for kh in range(k) for kw in range(k)]
    cols = jnp.stack(cols, axis=0)                    # [k*k, C, B, Ho, Wo]
    return cols.reshape(k * k * C, B * Ho * Wo), Ho, Wo


def capsule_network_forward(images, params, cfg):
    B = images.shape[0]
    I, Cp, O = cfg["ncaps"], cfg["Cprime"], cfg["D"]

    # --- ConvLayer: conv2d + ReLU as a transposed im2col GEMM (lane-dense out)
    x_cbhw = jnp.transpose(images, (1, 0, 2, 3))                    # [Cin, B, H, W]
    p1t, h1, w1 = _im2col_T(x_cbhw, cfg["k1"], cfg["s1"])           # [K1, B*h1*w1]
    featT = conv_relu_gemm_t(params["conv1_wT"], params["conv1_b"], p1t)  # [Cconv, B*h1*w1]
    feat_cbhw = featT.reshape(cfg["Cconv"], B, h1, w1)

    # --- PrimaryCaps: all 8 capsule convs as ONE transposed GEMM (run once) ---
    p2t, h2, w2 = _im2col_T(feat_cbhw, cfg["k2"], cfg["s2"])        # [K2, B*HW]
    HW = h2 * w2
    G = primary_caps_gemm(params["prim_wT"], params["prim_bT"], p2t)  # [(i,c'), (b,hw)]

    # One vectorized relayout to [B, I, P] with p = c'*HW + hw.  A single GEMM
    # cannot emit this layout (output rows/cols would each have to mix both
    # operands' free axes), so the shuffle is one fused XLA transpose here
    # instead of B*Cp masked sub-lane stores inside the kernel.
    u_raw = (G.reshape(I, Cp, B, HW)
              .transpose(2, 0, 1, 3)
              .reshape(B, I, Cp * HW))                              # [B, I, P]

    # --- squash + DigitCaps routing (all classes) + Decoder, fused -----------
    caps_output, recon, y = routing_and_decode(u_raw, params["digit_Wt"], params)
    return caps_output, recon, y


# ---------------------------------------------------------------------------
# Main
# ---------------------------------------------------------------------------
if __name__ == "__main__":
    # Small but structurally faithful configuration.
    cfg = dict(image_size=16, Cin=1, Cconv=16, k1=5, s1=1,
               ncaps=8, Cprime=8, k2=5, s2=2,
               num_classes=2, D=16, hidden=32)

    cs1 = (cfg["image_size"] - cfg["k1"]) // cfg["s1"] + 1           # 12
    cs2 = (cs1 - cfg["k2"]) // cfg["s2"] + 1                         # 4
    HW = cs2 * cs2                                                   # 16
    P = cfg["Cprime"] * HW                                           # 128
    K1 = cfg["Cin"] * cfg["k1"] ** 2                                 # 25
    K2 = cfg["Cconv"] * cfg["k2"] ** 2                               # 400
    NC = cfg["ncaps"] * cfg["Cprime"]                                # 64
    in_dim_dec = cfg["D"] * cfg["num_classes"]                       # 32

    key = jax.random.PRNGKey(0)
    keys = jax.random.split(key, 10)
    params = {
        # conv1 weights stored transposed: [Cout, Cin*k*k] (cols in (kh, kw, c) order)
        "conv1_wT": jax.random.normal(keys[0], (cfg["Cconv"], K1), jnp.float32) * 0.1,
        "conv1_b": jax.random.normal(keys[1], (cfg["Cconv"], 1), jnp.float32) * 0.01,
        # 8 primary-capsule convs fused & transposed: rows capsule-major (i, c');
        # cols ordered (kh, kw, conv channel) to match _im2col_T
        "prim_wT": jax.random.normal(keys[2], (NC, K2), jnp.float32) * 0.05,
        "prim_bT": jax.random.normal(keys[3], (NC, 1), jnp.float32) * 0.01,
        # DigitCaps W ~ randn, pre-laid out lane-dense: [C, I, O, P], p = c'*HW + hw
        "digit_Wt": jax.random.normal(
            keys[4], (cfg["num_classes"], cfg["ncaps"], cfg["D"], P), jnp.float32),
        # Decoder linear layers (stored as [in, out]); w1 rows class-major (c, o)
        "dec_w1": jax.random.normal(keys[5], (in_dim_dec, cfg["hidden"]), jnp.float32) * 0.1,
        "dec_b1": jnp.zeros((1, cfg["hidden"]), jnp.float32),
        "dec_w2": jax.random.normal(keys[6], (cfg["hidden"], cfg["hidden"] * 2), jnp.float32) * 0.1,
        "dec_b2": jnp.zeros((1, cfg["hidden"] * 2), jnp.float32),
        "dec_w3": jax.random.normal(keys[7], (cfg["hidden"] * 2, cfg["image_size"] ** 2), jnp.float32) * 0.1,
        "dec_b3": jnp.zeros((1, cfg["image_size"] ** 2), jnp.float32),
    }

    x = jax.random.normal(keys[8], (2, cfg["Cin"], cfg["image_size"], cfg["image_size"]),
                          jnp.float32)

    fwd = jax.jit(functools.partial(capsule_network_forward, cfg=cfg))
    caps_out, recon, y = fwd(x, params)
    jax.block_until_ready((caps_out, recon, y))
    assert caps_out.shape == (2, cfg["num_classes"], cfg["D"])
    assert recon.shape == (2, cfg["image_size"] ** 2)
    assert y.shape == (2, cfg["num_classes"])
    print("KERNEL_OK")
</pallas_src>

<mosaic_0001>
module attributes {stable_mosaic.version = 11 : i64} {
  func.func @_conv_relu_kernel(%arg0: i32, %arg1: memref<16x32xf32, #tpu.memory_space<vmem>>, %arg2: memref<16x1xf32, #tpu.memory_space<vmem>>, %arg3: memref<32x128xf32, #tpu.memory_space<vmem>>, %arg4: memref<16x128xf32, #tpu.memory_space<vmem>>) attributes {dimension_semantics = [#tpu.dimension_semantics<parallel>], iteration_bounds = array<i64: 3>, scalar_prefetch = 0 : i64, scratch_operands = 0 : i64, tpu.core_type = #tpu.core_type<tc>, window_params = [{pipeline_mode = #tpu.pipeline_mode<synchronous>, transform_indices = @transform_0, window_bounds = array<i64: 16, 32>}, {pipeline_mode = #tpu.pipeline_mode<synchronous>, transform_indices = @transform_1, window_bounds = array<i64: 16, 1>}, {transform_indices = @transform_2, window_bounds = array<i64: 32, 128>}, {transform_indices = @transform_3, window_bounds = array<i64: 16, 128>}]} {
    %c0 = arith.constant 0 : index
    %c0_0 = arith.constant 0 : index
    %0 = vector.load %arg1[%c0, %c0_0] : memref<16x32xf32, #tpu.memory_space<vmem>>, vector<16x32xf32>
    %1 = arith.truncf %0 : vector<16x32xf32> to vector<16x32xbf16>
    %c0_1 = arith.constant 0 : index
    %c0_2 = arith.constant 0 : index
    %2 = vector.load %arg3[%c0_1, %c0_2] : memref<32x128xf32, #tpu.memory_space<vmem>>, vector<32x128xf32>
    %3 = arith.truncf %2 : vector<32x128xf32> to vector<32x128xbf16>
    %cst = arith.constant dense<0.000000e+00> : vector<16x128xf32>
    %4 = tpu.matmul %1, %3, %cst {dimension_numbers = #tpu.dot_dimension_numbers<[1], [0], [0], [1], [0, 0, 1, 1], [], []>} : vector<16x32xbf16>, vector<32x128xbf16>, vector<16x128xf32> -> vector<16x128xf32>
    %c0_3 = arith.constant 0 : index
    %c0_4 = arith.constant 0 : index
    %5 = vector.load %arg2[%c0_3, %c0_4] : memref<16x1xf32, #tpu.memory_space<vmem>>, vector<16x1xf32>
    %6 = vector.broadcast %5 : vector<16x1xf32> to vector<16x128xf32>
    %7 = arith.addf %4, %6 : vector<16x128xf32>
    %cst_5 = arith.constant 0.000000e+00 : f32
    %8 = vector.broadcast %cst_5 : f32 to vector<16x128xf32>
    %9 = arith.maximumf %7, %8 : vector<16x128xf32>
    %c0_6 = arith.constant 0 : index
    %c0_7 = arith.constant 0 : index
    %10 = vector.load %arg4[%c0_6, %c0_7] : memref<16x128xf32, #tpu.memory_space<vmem>>, vector<16x128xf32>
    tpu.vector_store %arg4[%c0_6, %c0_7], %9 {strides = array<i32>} : memref<16x128xf32, #tpu.memory_space<vmem>>, vector<16x128xf32>,
    return
  }
  func.func @transform_0(%arg0: i32) -> (i32, i32) {
    %c0_i32 = arith.constant 0 : i32
    %c0_i32_0 = arith.constant 0 : i32
    %c0_i32_1 = arith.constant 0 : i32
    return %c0_i32, %c0_i32_0 : i32, i32
  }
  func.func @transform_1(%arg0: i32) -> (i32, i32) {
    %c0_i32 = arith.constant 0 : i32
    %c0_i32_0 = arith.constant 0 : i32
    %c0_i32_1 = arith.constant 0 : i32
    return %c0_i32, %c0_i32_0 : i32, i32
  }
  func.func @transform_2(%arg0: i32) -> (i32, i32) {
    %c0_i32 = arith.constant 0 : i32
    %c0_i32_0 = arith.constant 0 : i32
    return %c0_i32, %arg0 : i32, i32
  }
  func.func @transform_3(%arg0: i32) -> (i32, i32) {
    %c0_i32 = arith.constant 0 : i32
    %c0_i32_0 = arith.constant 0 : i32
    return %c0_i32, %arg0 : i32, i32
  }
}

module attributes {stable_mosaic.version = 11 : i64} {
  func.func @_primary_gemm_kernel(%arg0: memref<64x400xf32, #tpu.memory_space<vmem>>, %arg1: memref<64x1xf32, #tpu.memory_space<vmem>>, %arg2: memref<400x32xf32, #tpu.memory_space<vmem>>, %arg3: memref<64x32xf32, #tpu.memory_space<vmem>>) attributes {dimension_semantics = [], scalar_prefetch = 0 : i64, scratch_operands = 0 : i64, tpu.core_type = #tpu.core_type<tc>} {
    %c0 = arith.constant 0 : index
    %c0_0 = arith.constant 0 : index
    %0 = vector.load %arg0[%c0, %c0_0] : memref<64x400xf32, #tpu.memory_space<vmem>>, vector<64x400xf32>
    %1 = arith.truncf %0 : vector<64x400xf32> to vector<64x400xbf16>
    %c0_1 = arith.constant 0 : index
    %c0_2 = arith.constant 0 : index
    %2 = vector.load %arg2[%c0_1, %c0_2] : memref<400x32xf32, #tpu.memory_space<vmem>>, vector<400x32xf32>
    %3 = arith.truncf %2 : vector<400x32xf32> to vector<400x32xbf16>
    %cst = arith.constant dense<0.000000e+00> : vector<64x32xf32>
    %4 = tpu.matmul %1, %3, %cst {dimension_numbers = #tpu.dot_dimension_numbers<[1], [0], [0], [1], [0, 0, 1, 1], [], []>} : vector<64x400xbf16>, vector<400x32xbf16>, vector<64x32xf32> -> vector<64x32xf32>
    %c0_3 = arith.constant 0 : index
    %c0_4 = arith.constant 0 : index
    %5 = vector.load %arg1[%c0_3, %c0_4] : memref<64x1xf32, #tpu.memory_space<vmem>>, vector<64x1xf32>
    %6 = vector.broadcast %5 : vector<64x1xf32> to vector<64x32xf32>
    %7 = arith.addf %4, %6 : vector<64x32xf32>
    %c0_5 = arith.constant 0 : index
    %c0_6 = arith.constant 0 : index
    %8 = vector.load %arg3[%c0_5, %c0_6] : memref<64x32xf32, #tpu.memory_space<vmem>>, vector<64x32xf32>
    tpu.vector_store %arg3[%c0_5, %c0_6], %7 {strides = array<i32>} : memref<64x32xf32, #tpu.memory_space<vmem>>, vector<64x32xf32>,
    return
  }
}

module attributes {stable_mosaic.version = 11 : i64} {
  func.func @_routing_decoder_kernel(%arg0: memref<2x8x128xf32, #tpu.memory_space<vmem>>, %arg1: memref<2x8x16x128xf32, #tpu.memory_space<vmem>>, %arg2: memref<32x32xf32, #tpu.memory_space<vmem>>, %arg3: memref<1x32xf32, #tpu.memory_space<vmem>>, %arg4: memref<32x64xf32, #tpu.memory_space<vmem>>, %arg5: memref<1x64xf32, #tpu.memory_space<vmem>>, %arg6: memref<64x256xf32, #tpu.memory_space<vmem>>, %arg7: memref<1x256xf32, #tpu.memory_space<vmem>>, %arg8: memref<2x2x16xf32, #tpu.memory_space<vmem>>, %arg9: memref<2x256xf32, #tpu.memory_space<vmem>>, %arg10: memref<2x2xf32, #tpu.memory_space<vmem>>) attributes {dimension_semantics = [], scalar_prefetch = 0 : i64, scratch_operands = 0 : i64, tpu.core_type = #tpu.core_type<tc>} {
    %c0 = arith.constant 0 : index
    %c0_0 = arith.constant 0 : index
    %c0_1 = arith.constant 0 : index
    %0 = vector.load %arg0[%c0, %c0_0, %c0_1] : memref<2x8x128xf32, #tpu.memory_space<vmem>>, vector<2x1x128xf32>
    %1 = vector.shape_cast %0 : vector<2x1x128xf32> to vector<2x128xf32>
    %2 = arith.mulf %1, %1 : vector<2x128xf32>
    %c0_2 = arith.constant 0 : index
    %c1 = arith.constant 1 : index
    %c0_3 = arith.constant 0 : index
    %3 = vector.load %arg0[%c0_2, %c1, %c0_3] : memref<2x8x128xf32, #tpu.memory_space<vmem>>, vector<2x1x128xf32>
    %4 = vector.shape_cast %3 : vector<2x1x128xf32> to vector<2x128xf32>
    %5 = arith.mulf %4, %4 : vector<2x128xf32>
    %6 = arith.addf %2, %5 : vector<2x128xf32>
    %c0_4 = arith.constant 0 : index
    %c2 = arith.constant 2 : index
    %c0_5 = arith.constant 0 : index
    %7 = vector.load %arg0[%c0_4, %c2, %c0_5] : memref<2x8x128xf32, #tpu.memory_space<vmem>>, vector<2x1x128xf32>
    %8 = vector.shape_cast %7 : vector<2x1x128xf32> to vector<2x128xf32>
    %9 = arith.mulf %8, %8 : vector<2x128xf32>
    %10 = arith.addf %6, %9 : vector<2x128xf32>
    %c0_6 = arith.constant 0 : index
    %c3 = arith.constant 3 : index
    %c0_7 = arith.constant 0 : index
    %11 = vector.load %arg0[%c0_6, %c3, %c0_7] : memref<2x8x128xf32, #tpu.memory_space<vmem>>, vector<2x1x128xf32>
    %12 = vector.shape_cast %11 : vector<2x1x128xf32> to vector<2x128xf32>
    %13 = arith.mulf %12, %12 : vector<2x128xf32>
    %14 = arith.addf %10, %13 : vector<2x128xf32>
    %c0_8 = arith.constant 0 : index
    %c4 = arith.constant 4 : index
    %c0_9 = arith.constant 0 : index
    %15 = vector.load %arg0[%c0_8, %c4, %c0_9] : memref<2x8x128xf32, #tpu.memory_space<vmem>>, vector<2x1x128xf32>
    %16 = vector.shape_cast %15 : vector<2x1x128xf32> to vector<2x128xf32>
    %17 = arith.mulf %16, %16 : vector<2x128xf32>
    %18 = arith.addf %14, %17 : vector<2x128xf32>
    %c0_10 = arith.constant 0 : index
    %c5 = arith.constant 5 : index
    %c0_11 = arith.constant 0 : index
    %19 = vector.load %arg0[%c0_10, %c5, %c0_11] : memref<2x8x128xf32, #tpu.memory_space<vmem>>, vector<2x1x128xf32>
    %20 = vector.shape_cast %19 : vector<2x1x128xf32> to vector<2x128xf32>
    %21 = arith.mulf %20, %20 : vector<2x128xf32>
    %22 = arith.addf %18, %21 : vector<2x128xf32>
    %c0_12 = arith.constant 0 : index
    %c6 = arith.constant 6 : index
    %c0_13 = arith.constant 0 : index
    %23 = vector.load %arg0[%c0_12, %c6, %c0_13] : memref<2x8x128xf32, #tpu.memory_space<vmem>>, vector<2x1x128xf32>
    %24 = vector.shape_cast %23 : vector<2x1x128xf32> to vector<2x128xf32>
    %25 = arith.mulf %24, %24 : vector<2x128xf32>
    %26 = arith.addf %22, %25 : vector<2x128xf32>
    %c0_14 = arith.constant 0 : index
    %c7 = arith.constant 7 : index
    %c0_15 = arith.constant 0 : index
    %27 = vector.load %arg0[%c0_14, %c7, %c0_15] : memref<2x8x128xf32, #tpu.memory_space<vmem>>, vector<2x1x128xf32>
    %28 = vector.shape_cast %27 : vector<2x1x128xf32> to vector<2x128xf32>
    %29 = arith.mulf %28, %28 : vector<2x128xf32>
    %30 = arith.addf %26, %29 : vector<2x128xf32>
    %cst = arith.constant 1.000000e+00 : f32
    %31 = vector.broadcast %cst : f32 to vector<2x128xf32>
    %32 = arith.addf %31, %30 : vector<2x128xf32>
    %33 = arith.divf %30, %32 : vector<2x128xf32>
    %cst_16 = arith.constant 9.99999996E-13 : f32
    %34 = vector.broadcast %cst_16 : f32 to vector<2x128xf32>
    %35 = arith.addf %30, %34 : vector<2x128xf32>
    %36 = math.rsqrt %35 : vector<2x128xf32>
    %37 = arith.mulf %33, %36 : vector<2x128xf32>
    %c0_17 = arith.constant 0 : index
    %c0_18 = arith.constant 0 : index
    %c0_19 = arith.constant 0 : index
    %38 = vector.load %arg0[%c0_17, %c0_18, %c0_19] : memref<2x8x128xf32, #tpu.memory_space<vmem>>, vector<2x1x128xf32>
    %39 = vector.shape_cast %38 : vector<2x1x128xf32> to vector<2x128xf32>
    %40 = vector.shape_cast %39 : vector<2x128xf32> to vector<2x1x128xf32>
    %c0_20 = arith.constant 0 : index
    %c0_21 = arith.constant 0 : index
    %c0_22 = arith.constant 0 : index
    %c0_23 = arith.constant 0 : index
    %41 = vector.load %arg1[%c0_20, %c0_21, %c0_22, %c0_23] : memref<2x8x16x128xf32, #tpu.memory_space<vmem>>, vector<1x1x16x128xf32>
    %42 = vector.shape_cast %41 : vector<1x1x16x128xf32> to vector<16x128xf32>
    %43 = vector.shape_cast %42 : vector<16x128xf32> to vector<1x16x128xf32>
    %44 = vector.broadcast %40 : vector<2x1x128xf32> to vector<2x16x128xf32>
    %45 = vector.broadcast %43 : vector<1x16x128xf32> to vector<2x16x128xf32>
    %46 = arith.mulf %44, %45 : vector<2x16x128xf32>
    %c0_24 = arith.constant 0 : index
    %c1_25 = arith.constant 1 : index
    %c0_26 = arith.constant 0 : index
    %47 = vector.load %arg0[%c0_24, %c1_25, %c0_26] : memref<2x8x128xf32, #tpu.memory_space<vmem>>, vector<2x1x128xf32>
    %48 = vector.shape_cast %47 : vector<2x1x128xf32> to vector<2x128xf32>
    %49 = vector.shape_cast %48 : vector<2x128xf32> to vector<2x1x128xf32>
    %c0_27 = arith.constant 0 : index
    %c1_28 = arith.constant 1 : index
    %c0_29 = arith.constant 0 : index
    %c0_30 = arith.constant 0 : index
    %50 = vector.load %arg1[%c0_27, %c1_28, %c0_29, %c0_30] : memref<2x8x16x128xf32, #tpu.memory_space<vmem>>, vector<1x1x16x128xf32>
    %51 = vector.shape_cast %50 : vector<1x1x16x128xf32> to vector<16x128xf32>
    %52 = vector.shape_cast %51 : vector<16x128xf32> to vector<1x16x128xf32>
    %53 = vector.broadcast %49 : vector<2x1x128xf32> to vector<2x16x128xf32>
    %54 = vector.broadcast %52 : vector<1x16x128xf32> to vector<2x16x128xf32>
    %55 = arith.mulf %53, %54 : vector<2x16x128xf32>
    %56 = arith.addf %46, %55 : vector<2x16x128xf32>
    %c0_31 = arith.constant 0 : index
    %c2_32 = arith.constant 2 : index
    %c0_33 = arith.constant 0 : index
    %57 = vector.load %arg0[%c0_31, %c2_32, %c0_33] : memref<2x8x128xf32, #tpu.memory_space<vmem>>, vector<2x1x128xf32>
    %58 = vector.shape_cast %57 : vector<2x1x128xf32> to vector<2x128xf32>
    %59 = vector.shape_cast %58 : vector<2x128xf32> to vector<2x1x128xf32>
    %c0_34 = arith.constant 0 : index
    %c2_35 = arith.constant 2 : index
    %c0_36 = arith.constant 0 : index
    %c0_37 = arith.constant 0 : index
    %60 = vector.load %arg1[%c0_34, %c2_35, %c0_36, %c0_37] : memref<2x8x16x128xf32, #tpu.memory_space<vmem>>, vector<1x1x16x128xf32>
    %61 = vector.shape_cast %60 : vector<1x1x16x128xf32> to vector<16x128xf32>
    %62 = vector.shape_cast %61 : vector<16x128xf32> to vector<1x16x128xf32>
    %63 = vector.broadcast %59 : vector<2x1x128xf32> to vector<2x16x128xf32>
    %64 = vector.broadcast %62 : vector<1x16x128xf32> to vector<2x16x128xf32>
    %65 = arith.mulf %63, %64 : vector<2x16x128xf32>
    %66 = arith.addf %56, %65 : vector<2x16x128xf32>
    %c0_38 = arith.constant 0 : index
    %c3_39 = arith.constant 3 : index
    %c0_40 = arith.constant 0 : index
    %67 = vector.load %arg0[%c0_38, %c3_39, %c0_40] : memref<2x8x128xf32, #tpu.memory_space<vmem>>, vector<2x1x128xf32>
    %68 = vector.shape_cast %67 : vector<2x1x128xf32> to vector<2x128xf32>
    %69 = vector.shape_cast %68 : vector<2x128xf32> to vector<2x1x128xf32>
    %c0_41 = arith.constant 0 : index
    %c3_42 = arith.constant 3 : index
    %c0_43 = arith.constant 0 : index
    %c0_44 = arith.constant 0 : index
    %70 = vector.load %arg1[%c0_41, %c3_42, %c0_43, %c0_44] : memref<2x8x16x128xf32, #tpu.memory_space<vmem>>, vector<1x1x16x128xf32>
    %71 = vector.shape_cast %70 : vector<1x1x16x128xf32> to vector<16x128xf32>
    %72 = vector.shape_cast %71 : vector<16x128xf32> to vector<1x16x128xf32>
    %73 = vector.broadcast %69 : vector<2x1x128xf32> to vector<2x16x128xf32>
    %74 = vector.broadcast %72 : vector<1x16x128xf32> to vector<2x16x128xf32>
    %75 = arith.mulf %73, %74 : vector<2x16x128xf32>
    %76 = arith.addf %66, %75 : vector<2x16x128xf32>
    %c0_45 = arith.constant 0 : index
    %c4_46 = arith.constant 4 : index
    %c0_47 = arith.constant 0 : index
    %77 = vector.load %arg0[%c0_45, %c4_46, %c0_47] : memref<2x8x128xf32, #tpu.memory_space<vmem>>, vector<2x1x128xf32>
    %78 = vector.shape_cast %77 : vector<2x1x128xf32> to vector<2x128xf32>
    %79 = vector.shape_cast %78 : vector<2x128xf32> to vector<2x1x128xf32>
    %c0_48 = arith.constant 0 : index
    %c4_49 = arith.constant 4 : index
    %c0_50 = arith.constant 0 : index
    %c0_51 = arith.constant 0 : index
    %80 = vector.load %arg1[%c0_48, %c4_49, %c0_50, %c0_51] : memref<2x8x16x128xf32, #tpu.memory_space<vmem>>, vector<1x1x16x128xf32>
    %81 = vector.shape_cast %80 : vector<1x1x16x128xf32> to vector<16x128xf32>
    %82 = vector.shape_cast %81 : vector<16x128xf32> to vector<1x16x128xf32>
    %83 = vector.broadcast %79 : vector<2x1x128xf32> to vector<2x16x128xf32>
    %84 = vector.broadcast %82 : vector<1x16x128xf32> to vector<2x16x128xf32>
    %85 = arith.mulf %83, %84 : vector<2x16x128xf32>
    %86 = arith.addf %76, %85 : vector<2x16x128xf32>
    %c0_52 = arith.constant 0 : index
    %c5_53 = arith.constant 5 : index
    %c0_54 = arith.constant 0 : index
    %87 = vector.load %arg0[%c0_52, %c5_53, %c0_54] : memref<2x8x128xf32, #tpu.memory_space<vmem>>, vector<2x1x128xf32>
    %88 = vector.shape_cast %87 : vector<2x1x128xf32> to vector<2x128xf32>
    %89 = vector.shape_cast %88 : vector<2x128xf32> to vector<2x1x128xf32>
    %c0_55 = arith.constant 0 : index
    %c5_56 = arith.constant 5 : index
    %c0_57 = arith.constant 0 : index
    %c0_58 = arith.constant 0 : index
    %90 = vector.load %arg1[%c0_55, %c5_56, %c0_57, %c0_58] : memref<2x8x16x128xf32, #tpu.memory_space<vmem>>, vector<1x1x16x128xf32>
    %91 = vector.shape_cast %90 : vector<1x1x16x128xf32> to vector<16x128xf32>
    %92 = vector.shape_cast %91 : vector<16x128xf32> to vector<1x16x128xf32>
    %93 = vector.broadcast %89 : vector<2x1x128xf32> to vector<2x16x128xf32>
    %94 = vector.broadcast %92 : vector<1x16x128xf32> to vector<2x16x128xf32>
    %95 = arith.mulf %93, %94 : vector<2x16x128xf32>
    %96 = arith.addf %86, %95 : vector<2x16x128xf32>
    %c0_59 = arith.constant 0 : index
    %c6_60 = arith.constant 6 : index
    %c0_61 = arith.constant 0 : index
    %97 = vector.load %arg0[%c0_59, %c6_60, %c0_61] : memref<2x8x128xf32, #tpu.memory_space<vmem>>, vector<2x1x128xf32>
    %98 = vector.shape_cast %97 : vector<2x1x128xf32> to vector<2x128xf32>
    %99 = vector.shape_cast %98 : vector<2x128xf32> to vector<2x1x128xf32>
    %c0_62 = arith.constant 0 : index
    %c6_63 = arith.constant 6 : index
    %c0_64 = arith.constant 0 : index
    %c0_65 = arith.constant 0 : index
    %100 = vector.load %arg1[%c0_62, %c6_63, %c0_64, %c0_65] : memref<2x8x16x128xf32, #tpu.memory_space<vmem>>, vector<1x1x16x128xf32>
    %101 = vector.shape_cast %100 : vector<1x1x16x128xf32> to vector<16x128xf32>
    %102 = vector.shape_cast %101 : vector<16x128xf32> to vector<1x16x128xf32>
    %103 = vector.broadcast %99 : vector<2x1x128xf32> to vector<2x16x128xf32>
    %104 = vector.broadcast %102 : vector<1x16x128xf32> to vector<2x16x128xf32>
    %105 = arith.mulf %103, %104 : vector<2x16x128xf32>
    %106 = arith.addf %96, %105 : vector<2x16x128xf32>
    %c0_66 = arith.constant 0 : index
    %c7_67 = arith.constant 7 : index
    %c0_68 = arith.constant 0 : index
    %107 = vector.load %arg0[%c0_66, %c7_67, %c0_68] : memref<2x8x128xf32, #tpu.memory_space<vmem>>, vector<2x1x128xf32>
    %108 = vector.shape_cast %107 : vector<2x1x128xf32> to vector<2x128xf32>
    %109 = vector.shape_cast %108 : vector<2x128xf32> to vector<2x1x128xf32>
    %c0_69 = arith.constant 0 : index
    %c7_70 = arith.constant 7 : index
    %c0_71 = arith.constant 0 : index
    %c0_72 = arith.constant 0 : index
    %110 = vector.load %arg1[%c0_69, %c7_70, %c0_71, %c0_72] : memref<2x8x16x128xf32, #tpu.memory_space<vmem>>, vector<1x1x16x128xf32>
    %111 = vector.shape_cast %110 : vector<1x1x16x128xf32> to vector<16x128xf32>
    %112 = vector.shape_cast %111 : vector<16x128xf32> to vector<1x16x128xf32>
    %113 = vector.broadcast %109 : vector<2x1x128xf32> to vector<2x16x128xf32>
    %114 = vector.broadcast %112 : vector<1x16x128xf32> to vector<2x16x128xf32>
    %115 = arith.mulf %113, %114 : vector<2x16x128xf32>
    %116 = arith.addf %106, %115 : vector<2x16x128xf32>
    %117 = vector.shape_cast %37 : vector<2x128xf32> to vector<2x1x128xf32>
    %118 = vector.broadcast %117 : vector<2x1x128xf32> to vector<2x16x128xf32>
    %119 = arith.mulf %116, %118 : vector<2x16x128xf32>
    %cst_73 = arith.constant 0.000000e+00 : f32
    %120 = vector.broadcast %cst_73 : f32 to vector<2x128xf32>
    %cst_74 = arith.constant dense<0.000000e+00> : vector<2x16xf32>
    %121 = vector.multi_reduction <add>, %119, %cst_74 [2] : vector<2x16x128xf32> to vector<2x16xf32>
    %cst_75 = arith.constant 7.812500e-03 : f32
    %122 = vector.broadcast %cst_75 : f32 to vector<2x16xf32>
    %123 = arith.mulf %121, %122 : vector<2x16xf32>
    %124 = arith.mulf %123, %123 : vector<2x16xf32>
    %cst_76 = arith.constant dense<0.000000e+00> : vector<2xf32>
    %125 = vector.multi_reduction <add>, %124, %cst_76 [1] : vector<2x16xf32> to vector<2xf32>
    %126 = vector.shape_cast %125 : vector<2xf32> to vector<2x1xf32>
    %cst_77 = arith.constant 1.000000e+00 : f32
    %127 = vector.broadcast %cst_77 : f32 to vector<2x1xf32>
    %128 = arith.addf %127, %126 : vector<2x1xf32>
    %129 = arith.divf %126, %128 : vector<2x1xf32>
    %130 = vector.broadcast %129 : vector<2x1xf32> to vector<2x16xf32>
    %131 = arith.mulf %130, %123 : vector<2x16xf32>
    %cst_78 = arith.constant 9.99999996E-13 : f32
    %132 = vector.broadcast %cst_78 : f32 to vector<2x1xf32>
    %133 = arith.addf %126, %132 : vector<2x1xf32>
    %134 = math.rsqrt %133 : vector<2x1xf32>
    %135 = vector.broadcast %134 : vector<2x1xf32> to vector<2x16xf32>
    %136 = arith.mulf %131, %135 : vector<2x16xf32>
    %137 = vector.shape_cast %136 : vector<2x16xf32> to vector<2x16x1xf32>
    %138 = vector.broadcast %137 : vector<2x16x1xf32> to vector<2x16x128xf32>
    %139 = arith.mulf %119, %138 : vector<2x16x128xf32>
    %cst_79 = arith.constant dense<0.000000e+00> : vector<2x128xf32>
    %140 = vector.multi_reduction <add>, %139, %cst_79 [1] : vector<2x16x128xf32> to vector<2x128xf32>
    %141 = arith.addf %120, %140 : vector<2x128xf32>
    %cst_80 = arith.constant dense<0xFF800000> : vector<2xf32>
    %142 = vector.multi_reduction <maximumf>, %141, %cst_80 [1] : vector<2x128xf32> to vector<2xf32>
    %143 = vector.shape_cast %142 : vector<2xf32> to vector<2x1xf32>
    %144 = vector.broadcast %143 : vector<2x1xf32> to vector<2x128xf32>
    %145 = arith.subf %141, %144 : vector<2x128xf32>
    %146 = math.exp %145 : vector<2x128xf32>
    %cst_81 = arith.constant dense<0.000000e+00> : vector<2xf32>
    %147 = vector.multi_reduction <add>, %146, %cst_81 [1] : vector<2x128xf32> to vector<2xf32>
    %148 = vector.shape_cast %147 : vector<2xf32> to vector<2x1xf32>
    %149 = tpu.reciprocal %148 {approx = true} : vector<2x1xf32> -> vector<2x1xf32>
    %150 = vector.broadcast %149 : vector<2x1xf32> to vector<2x128xf32>
    %151 = arith.mulf %146, %150 : vector<2x128xf32>
    %152 = vector.shape_cast %151 : vector<2x128xf32> to vector<2x1x128xf32>
    %153 = vector.broadcast %152 : vector<2x1x128xf32> to vector<2x16x128xf32>
    %154 = arith.mulf %153, %119 : vector<2x16x128xf32>
    %cst_82 = arith.constant dense<0.000000e+00> : vector<2x16xf32>
    %155 = vector.multi_reduction <add>, %154, %cst_82 [2] : vector<2x16x128xf32> to vector<2x16xf32>
    %156 = arith.mulf %155, %155 : vector<2x16xf32>
    %cst_83 = arith.constant dense<0.000000e+00> : vector<2xf32>
    %157 = vector.multi_reduction <add>, %156, %cst_83 [1] : vector<2x16xf32> to vector<2xf32>
    %158 = vector.shape_cast %157 : vector<2xf32> to vector<2x1xf32>
    %cst_84 = arith.constant 1.000000e+00 : f32
    %159 = vector.broadcast %cst_84 : f32 to vector<2x1xf32>
    %160 = arith.addf %159, %158 : vector<2x1xf32>
    %161 = arith.divf %158, %160 : vector<2x1xf32>
    %162 = vector.broadcast %161 : vector<2x1xf32> to vector<2x16xf32>
    %163 = arith.mulf %162, %155 : vector<2x16xf32>
    %cst_85 = arith.constant 9.99999996E-13 : f32
    %164 = vector.broadcast %cst_85 : f32 to vector<2x1xf32>
    %165 = arith.addf %158, %164 : vector<2x1xf32>
    %166 = math.rsqrt %165 : vector<2x1xf32>
    %167 = vector.broadcast %166 : vector<2x1xf32> to vector<2x16xf32>
    %168 = arith.mulf %163, %167 : vector<2x16xf32>
    %169 = vector.shape_cast %168 : vector<2x16xf32> to vector<2x16x1xf32>
    %170 = vector.broadcast %169 : vector<2x16x1xf32> to vector<2x16x128xf32>
    %171 = arith.mulf %119, %170 : vector<2x16x128xf32>
    %cst_86 = arith.constant dense<0.000000e+00> : vector<2x128xf32>
    %172 = vector.multi_reduction <add>, %171, %cst_86 [1] : vector<2x16x128xf32> to vector<2x128xf32>
    %173 = arith.addf %141, %172 : vector<2x128xf32>
    %cst_87 = arith.constant dense<0xFF800000> : vector<2xf32>
    %174 = vector.multi_reduction <maximumf>, %173, %cst_87 [1] : vector<2x128xf32> to vector<2xf32>
    %175 = vector.shape_cast %174 : vector<2xf32> to vector<2x1xf32>
    %176 = vector.broadcast %175 : vector<2x1xf32> to vector<2x128xf32>
    %177 = arith.subf %173, %176 : vector<2x128xf32>
    %178 = math.exp %177 : vector<2x128xf32>
    %cst_88 = arith.constant dense<0.000000e+00> : vector<2xf32>
    %179 = vector.multi_reduction <add>, %178, %cst_88 [1] : vector<2x128xf32> to vector<2xf32>
    %180 = vector.shape_cast %179 : vector<2xf32> to vector<2x1xf32>
    %181 = tpu.reciprocal %180 {approx = true} : vector<2x1xf32> -> vector<2x1xf32>
    %182 = vector.broadcast %181 : vector<2x1xf32> to vector<2x128xf32>
    %183 = arith.mulf %178, %182 : vector<2x128xf32>
    %184 = vector.shape_cast %183 : vector<2x128xf32> to vector<2x1x128xf32>
    %185 = vector.broadcast %184 : vector<2x1x128xf32> to vector<2x16x128xf32>
    %186 = arith.mulf %185, %119 : vector<2x16x128xf32>
    %cst_89 = arith.constant dense<0.000000e+00> : vector<2x16xf32>
    %187 = vector.multi_reduction <add>, %186, %cst_89 [2] : vector<2x16x128xf32> to vector<2x16xf32>
    %188 = arith.mulf %187, %187 : vector<2x16xf32>
    %cst_90 = arith.constant dense<0.000000e+00> : vector<2xf32>
    %189 = vector.multi_reduction <add>, %188, %cst_90 [1] : vector<2x16xf32> to vector<2xf32>
    %190 = vector.shape_cast %189 : vector<2xf32> to vector<2x1xf32>
    %cst_91 = arith.constant 1.000000e+00 : f32
    %191 = vector.broadcast %cst_91 : f32 to vector<2x1xf32>
    %192 = arith.addf %191, %190 : vector<2x1xf32>
    %193 = arith.divf %190, %192 : vector<2x1xf32>
    %194 = vector.broadcast %193 : vector<2x1xf32> to vector<2x16xf32>
    %195 = arith.mulf %194, %187 : vector<2x16xf32>
    %cst_92 = arith.constant 9.99999996E-13 : f32
    %196 = vector.broadcast %cst_92 : f32 to vector<2x1xf32>
    %197 = arith.addf %190, %196 : vector<2x1xf32>
    %198 = math.rsqrt %197 : vector<2x1xf32>
    %199 = vector.broadcast %198 : vector<2x1xf32> to vector<2x16xf32>
    %200 = arith.mulf %195, %199 : vector<2x16xf32>
    %c0_93 = arith.constant 0 : index
    %c0_94 = arith.constant 0 : index
    %c0_95 = arith.constant 0 : index
    %201 = vector.load %arg8[%c0_93, %c0_94, %c0_95] : memref<2x2x16xf32, #tpu.memory_space<vmem>>, vector<2x1x16xf32>
    %202 = vector.shape_cast %201 : vector<2x1x16xf32> to vector<2x16xf32>
    %203 = vector.shape_cast %200 : vector<2x16xf32> to vector<2x1x16xf32>
    tpu.vector_store %arg8[%c0_93, %c0_94, %c0_95], %203 {strides = array<i32>} : memref<2x2x16xf32, #tpu.memory_space<vmem>>, vector<2x1x16xf32>,
    %c0_96 = arith.constant 0 : index
    %c0_97 = arith.constant 0 : index
    %c0_98 = arith.constant 0 : index
    %204 = vector.load %arg0[%c0_96, %c0_97, %c0_98] : memref<2x8x128xf32, #tpu.memory_space<vmem>>, vector<2x1x128xf32>
    %205 = vector.shape_cast %204 : vector<2x1x128xf32> to vector<2x128xf32>
    %206 = vector.shape_cast %205 : vector<2x128xf32> to vector<2x1x128xf32>
    %c1_99 = arith.constant 1 : index
    %c0_100 = arith.constant 0 : index
    %c0_101 = arith.constant 0 : index
    %c0_102 = arith.constant 0 : index
    %207 = vector.load %arg1[%c1_99, %c0_100, %c0_101, %c0_102] : memref<2x8x16x128xf32, #tpu.memory_space<vmem>>, vector<1x1x16x128xf32>
    %208 = vector.shape_cast %207 : vector<1x1x16x128xf32> to vector<16x128xf32>
    %209 = vector.shape_cast %208 : vector<16x128xf32> to vector<1x16x128xf32>
    %210 = vector.broadcast %206 : vector<2x1x128xf32> to vector<2x16x128xf32>
    %211 = vector.broadcast %209 : vector<1x16x128xf32> to vector<2x16x128xf32>
    %212 = arith.mulf %210, %211 : vector<2x16x128xf32>
    %c0_103 = arith.constant 0 : index
    %c1_104 = arith.constant 1 : index
    %c0_105 = arith.constant 0 : index
    %213 = vector.load %arg0[%c0_103, %c1_104, %c0_105] : memref<2x8x128xf32, #tpu.memory_space<vmem>>, vector<2x1x128xf32>
    %214 = vector.shape_cast %213 : vector<2x1x128xf32> to vector<2x128xf32>
    %215 = vector.shape_cast %214 : vector<2x128xf32> to vector<2x1x128xf32>
    %c1_106 = arith.constant 1 : index
    %c1_107 = arith.constant 1 : index
    %c0_108 = arith.constant 0 : index
    %c0_109 = arith.constant 0 : index
    %216 = vector.load %arg1[%c1_106, %c1_107, %c0_108, %c0_109] : memref<2x8x16x128xf32, #tpu.memory_space<vmem>>, vector<1x1x16x128xf32>
    %217 = vector.shape_cast %216 : vector<1x1x16x128xf32> to vector<16x128xf32>
    %218 = vector.shape_cast %217 : vector<16x128xf32> to vector<1x16x128xf32>
    %219 = vector.broadcast %215 : vector<2x1x128xf32> to vector<2x16x128xf32>
    %220 = vector.broadcast %218 : vector<1x16x128xf32> to vector<2x16x128xf32>
    %221 = arith.mulf %219, %220 : vector<2x16x128xf32>
    %222 = arith.addf %212, %221 : vector<2x16x128xf32>
    %c0_110 = arith.constant 0 : index
    %c2_111 = arith.constant 2 : index
    %c0_112 = arith.constant 0 : index
    %223 = vector.load %arg0[%c0_110, %c2_111, %c0_112] : memref<2x8x128xf32, #tpu.memory_space<vmem>>, vector<2x1x128xf32>
    %224 = vector.shape_cast %223 : vector<2x1x128xf32> to vector<2x128xf32>
    %225 = vector.shape_cast %224 : vector<2x128xf32> to vector<2x1x128xf32>
    %c1_113 = arith.constant 1 : index
    %c2_114 = arith.constant 2 : index
    %c0_115 = arith.constant 0 : index
    %c0_116 = arith.constant 0 : index
    %226 = vector.load %arg1[%c1_113, %c2_114, %c0_115, %c0_116] : memref<2x8x16x128xf32, #tpu.memory_space<vmem>>, vector<1x1x16x128xf32>
    %227 = vector.shape_cast %226 : vector<1x1x16x128xf32> to vector<16x128xf32>
    %228 = vector.shape_cast %227 : vector<16x128xf32> to vector<1x16x128xf32>
    %229 = vector.broadcast %225 : vector<2x1x128xf32> to vector<2x16x128xf32>
    %230 = vector.broadcast %228 : vector<1x16x128xf32> to vector<2x16x128xf32>
    %231 = arith.mulf %229, %230 : vector<2x16x128xf32>
    %232 = arith.addf %222, %231 : vector<2x16x128xf32>
    %c0_117 = arith.constant 0 : index
    %c3_118 = arith.constant 3 : index
    %c0_119 = arith.constant 0 : index
    %233 = vector.load %arg0[%c0_117, %c3_118, %c0_119] : memref<2x8x128xf32, #tpu.memory_space<vmem>>, vector<2x1x128xf32>
    %234 = vector.shape_cast %233 : vector<2x1x128xf32> to vector<2x128xf32>
    %235 = vector.shape_cast %234 : vector<2x128xf32> to vector<2x1x128xf32>
    %c1_120 = arith.constant 1 : index
    %c3_121 = arith.constant 3 : index
    %c0_122 = arith.constant 0 : index
    %c0_123 = arith.constant 0 : index
    %236 = vector.load %arg1[%c1_120, %c3_121, %c0_122, %c0_123] : memref<2x8x16x128xf32, #tpu.memory_space<vmem>>, vector<1x1x16x128xf32>
    %237 = vector.shape_cast %236 : vector<1x1x16x128xf32> to vector<16x128xf32>
    %238 = vector.shape_cast %237 : vector<16x128xf32> to vector<1x16x128xf32>
    %239 = vector.broadcast %235 : vector<2x1x128xf32> to vector<2x16x128xf32>
    %240 = vector.broadcast %238 : vector<1x16x128xf32> to vector<2x16x128xf32>
    %241 = arith.mulf %239, %240 : vector<2x16x128xf32>
    %242 = arith.addf %232, %241 : vector<2x16x128xf32>
    %c0_124 = arith.constant 0 : index
    %c4_125 = arith.constant 4 : index
    %c0_126 = arith.constant 0 : index
    %243 = vector.load %arg0[%c0_124, %c4_125, %c0_126] : memref<2x8x128xf32, #tpu.memory_space<vmem>>, vector<2x1x128xf32>
    %244 = vector.shape_cast %243 : vector<2x1x128xf32> to vector<2x128xf32>
    %245 = vector.shape_cast %244 : vector<2x128xf32> to vector<2x1x128xf32>
    %c1_127 = arith.constant 1 : index
    %c4_128 = arith.constant 4 : index
    %c0_129 = arith.constant 0 : index
    %c0_130 = arith.constant 0 : index
    %246 = vector.load %arg1[%c1_127, %c4_128, %c0_129, %c0_130] : memref<2x8x16x128xf32, #tpu.memory_space<vmem>>, vector<1x1x16x128xf32>
    %247 = vector.shape_cast %246 : vector<1x1x16x128xf32> to vector<16x128xf32>
    %248 = vector.shape_cast %247 : vector<16x128xf32> to vector<1x16x128xf32>
    %249 = vector.broadcast %245 : vector<2x1x128xf32> to vector<2x16x128xf32>
    %250 = vector.broadcast %248 : vector<1x16x128xf32> to vector<2x16x128xf32>
    %251 = arith.mulf %249, %250 : vector<2x16x128xf32>
    %252 = arith.addf %242, %251 : vector<2x16x128xf32>
    %c0_131 = arith.constant 0 : index
    %c5_132 = arith.constant 5 : index
    %c0_133 = arith.constant 0 : index
    %253 = vector.load %arg0[%c0_131, %c5_132, %c0_133] : memref<2x8x128xf32, #tpu.memory_space<vmem>>, vector<2x1x128xf32>
    %254 = vector.shape_cast %253 : vector<2x1x128xf32> to vector<2x128xf32>
    %255 = vector.shape_cast %254 : vector<2x128xf32> to vector<2x1x128xf32>
    %c1_134 = arith.constant 1 : index
    %c5_135 = arith.constant 5 : index
    %c0_136 = arith.constant 0 : index
    %c0_137 = arith.constant 0 : index
    %256 = vector.load %arg1[%c1_134, %c5_135, %c0_136, %c0_137] : memref<2x8x16x128xf32, #tpu.memory_space<vmem>>, vector<1x1x16x128xf32>
    %257 = vector.shape_cast %256 : vector<1x1x16x128xf32> to vector<16x128xf32>
    %258 = vector.shape_cast %257 : vector<16x128xf32> to vector<1x16x128xf32>
    %259 = vector.broadcast %255 : vector<2x1x128xf32> to vector<2x16x128xf32>
    %260 = vector.broadcast %258 : vector<1x16x128xf32> to vector<2x16x128xf32>
    %261 = arith.mulf %259, %260 : vector<2x16x128xf32>
    %262 = arith.addf %252, %261 : vector<2x16x128xf32>
    %c0_138 = arith.constant 0 : index
    %c6_139 = arith.constant 6 : index
    %c0_140 = arith.constant 0 : index
    %263 = vector.load %arg0[%c0_138, %c6_139, %c0_140] : memref<2x8x128xf32, #tpu.memory_space<vmem>>, vector<2x1x128xf32>
    %264 = vector.shape_cast %263 : vector<2x1x128xf32> to vector<2x128xf32>
    %265 = vector.shape_cast %264 : vector<2x128xf32> to vector<2x1x128xf32>
    %c1_141 = arith.constant 1 : index
    %c6_142 = arith.constant 6 : index
    %c0_143 = arith.constant 0 : index
    %c0_144 = arith.constant 0 : index
    %266 = vector.load %arg1[%c1_141, %c6_142, %c0_143, %c0_144] : memref<2x8x16x128xf32, #tpu.memory_space<vmem>>, vector<1x1x16x128xf32>
    %267 = vector.shape_cast %266 : vector<1x1x16x128xf32> to vector<16x128xf32>
    %268 = vector.shape_cast %267 : vector<16x128xf32> to vector<1x16x128xf32>
    %269 = vector.broadcast %265 : vector<2x1x128xf32> to vector<2x16x128xf32>
    %270 = vector.broadcast %268 : vector<1x16x128xf32> to vector<2x16x128xf32>
    %271 = arith.mulf %269, %270 : vector<2x16x128xf32>
    %272 = arith.addf %262, %271 : vector<2x16x128xf32>
    %c0_145 = arith.constant 0 : index
    %c7_146 = arith.constant 7 : index
    %c0_147 = arith.constant 0 : index
    %273 = vector.load %arg0[%c0_145, %c7_146, %c0_147] : memref<2x8x128xf32, #tpu.memory_space<vmem>>, vector<2x1x128xf32>
    %274 = vector.shape_cast %273 : vector<2x1x128xf32> to vector<2x128xf32>
    %275 = vector.shape_cast %274 : vector<2x128xf32> to vector<2x1x128xf32>
    %c1_148 = arith.constant 1 : index
    %c7_149 = arith.constant 7 : index
    %c0_150 = arith.constant 0 : index
    %c0_151 = arith.constant 0 : index
    %276 = vector.load %arg1[%c1_148, %c7_149, %c0_150, %c0_151] : memref<2x8x16x128xf32, #tpu.memory_space<vmem>>, vector<1x1x16x128xf32>
    %277 = vector.shape_cast %276 : vector<1x1x16x128xf32> to vector<16x128xf32>
    %278 = vector.shape_cast %277 : vector<16x128xf32> to vector<1x16x128xf32>
    %279 = vector.broadcast %275 : vector<2x1x128xf32> to vector<2x16x128xf32>
    %280 = vector.broadcast %278 : vector<1x16x128xf32> to vector<2x16x128xf32>
    %281 = arith.mulf %279, %280 : vector<2x16x128xf32>
    %282 = arith.addf %272, %281 : vector<2x16x128xf32>
    %283 = vector.shape_cast %37 : vector<2x128xf32> to vector<2x1x128xf32>
    %284 = vector.broadcast %283 : vector<2x1x128xf32> to vector<2x16x128xf32>
    %285 = arith.mulf %282, %284 : vector<2x16x128xf32>
    %cst_152 = arith.constant 0.000000e+00 : f32
    %286 = vector.broadcast %cst_152 : f32 to vector<2x128xf32>
    %cst_153 = arith.constant dense<0.000000e+00> : vector<2x16xf32>
    %287 = vector.multi_reduction <add>, %285, %cst_153 [2] : vector<2x16x128xf32> to vector<2x16xf32>
    %cst_154 = arith.constant 7.812500e-03 : f32
    %288 = vector.broadcast %cst_154 : f32 to vector<2x16xf32>
    %289 = arith.mulf %287, %288 : vector<2x16xf32>
    %290 = arith.mulf %289, %289 : vector<2x16xf32>
    %cst_155 = arith.constant dense<0.000000e+00> : vector<2xf32>
    %291 = vector.multi_reduction <add>, %290, %cst_155 [1] : vector<2x16xf32> to vector<2xf32>
    %292 = vector.shape_cast %291 : vector<2xf32> to vector<2x1xf32>
    %cst_156 = arith.constant 1.000000e+00 : f32
    %293 = vector.broadcast %cst_156 : f32 to vector<2x1xf32>
    %294 = arith.addf %293, %292 : vector<2x1xf32>
    %295 = arith.divf %292, %294 : vector<2x1xf32>
    %296 = vector.broadcast %295 : vector<2x1xf32> to vector<2x16xf32>
    %297 = arith.mulf %296, %289 : vector<2x16xf32>
    %cst_157 = arith.constant 9.99999996E-13 : f32
    %298 = vector.broadcast %cst_157 : f32 to vector<2x1xf32>
    %299 = arith.addf %292, %298 : vector<2x1xf32>
    %300 = math.rsqrt %299 : vector<2x1xf32>
    %301 = vector.broadcast %300 : vector<2x1xf32> to vector<2x16xf32>
    %302 = arith.mulf %297, %301 : vector<2x16xf32>
    %303 = vector.shape_cast %302 : vector<2x16xf32> to vector<2x16x1xf32>
    %304 = vector.broadcast %303 : vector<2x16x1xf32> to vector<2x16x128xf32>
    %305 = arith.mulf %285, %304 : vector<2x16x128xf32>
    %cst_158 = arith.constant dense<0.000000e+00> : vector<2x128xf32>
    %306 = vector.multi_reduction <add>, %305, %cst_158 [1] : vector<2x16x128xf32> to vector<2x128xf32>
    %307 = arith.addf %286, %306 : vector<2x128xf32>
    %cst_159 = arith.constant dense<0xFF800000> : vector<2xf32>
    %308 = vector.multi_reduction <maximumf>, %307, %cst_159 [1] : vector<2x128xf32> to vector<2xf32>
    %309 = vector.shape_cast %308 : vector<2xf32> to vector<2x1xf32>
    %310 = vector.broadcast %309 : vector<2x1xf32> to vector<2x128xf32>
    %311 = arith.subf %307, %310 : vector<2x128xf32>
    %312 = math.exp %311 : vector<2x128xf32>
    %cst_160 = arith.constant dense<0.000000e+00> : vector<2xf32>
    %313 = vector.multi_reduction <add>, %312, %cst_160 [1] : vector<2x128xf32> to vector<2xf32>
    %314 = vector.shape_cast %313 : vector<2xf32> to vector<2x1xf32>
    %315 = tpu.reciprocal %314 {approx = true} : vector<2x1xf32> -> vector<2x1xf32>
    %316 = vector.broadcast %315 : vector<2x1xf32> to vector<2x128xf32>
    %317 = arith.mulf %312, %316 : vector<2x128xf32>
    %318 = vector.shape_cast %317 : vector<2x128xf32> to vector<2x1x128xf32>
    %319 = vector.broadcast %318 : vector<2x1x128xf32> to vector<2x16x128xf32>
    %320 = arith.mulf %319, %285 : vector<2x16x128xf32>
    %cst_161 = arith.constant dense<0.000000e+00> : vector<2x16xf32>
    %321 = vector.multi_reduction <add>, %320, %cst_161 [2] : vector<2x16x128xf32> to vector<2x16xf32>
    %322 = arith.mulf %321, %321 : vector<2x16xf32>
    %cst_162 = arith.constant dense<0.000000e+00> : vector<2xf32>
    %323 = vector.multi_reduction <add>, %322, %cst_162 [1] : vector<2x16xf32> to vector<2xf32>
    %324 = vector.shape_cast %323 : vector<2xf32> to vector<2x1xf32>
    %cst_163 = arith.constant 1.000000e+00 : f32
    %325 = vector.broadcast %cst_163 : f32 to vector<2x1xf32>
    %326 = arith.addf %325, %324 : vector<2x1xf32>
    %327 = arith.divf %324, %326 : vector<2x1xf32>
    %328 = vector.broadcast %327 : vector<2x1xf32> to vector<2x16xf32>
    %329 = arith.mulf %328, %321 : vector<2x16xf32>
    %cst_164 = arith.constant 9.99999996E-13 : f32
    %330 = vector.broadcast %cst_164 : f32 to vector<2x1xf32>
    %331 = arith.addf %324, %330 : vector<2x1xf32>
    %332 = math.rsqrt %331 : vector<2x1xf32>
    %333 = vector.broadcast %332 : vector<2x1xf32> to vector<2x16xf32>
    %334 = arith.mulf %329, %333 : vector<2x16xf32>
    %335 = vector.shape_cast %334 : vector<2x16xf32> to vector<2x16x1xf32>
    %336 = vector.broadcast %335 : vector<2x16x1xf32> to vector<2x16x128xf32>
    %337 = arith.mulf %285, %336 : vector<2x16x128xf32>
    %cst_165 = arith.constant dense<0.000000e+00> : vector<2x128xf32>
    %338 = vector.multi_reduction <add>, %337, %cst_165 [1] : vector<2x16x128xf32> to vector<2x128xf32>
    %339 = arith.addf %307, %338 : vector<2x128xf32>
    %cst_166 = arith.constant dense<0xFF800000> : vector<2xf32>
    %340 = vector.multi_reduction <maximumf>, %339, %cst_166 [1] : vector<2x128xf32> to vector<2xf32>
    %341 = vector.shape_cast %340 : vector<2xf32> to vector<2x1xf32>
    %342 = vector.broadcast %341 : vector<2x1xf32> to vector<2x128xf32>
    %343 = arith.subf %339, %342 : vector<2x128xf32>
    %344 = math.exp %343 : vector<2x128xf32>
    %cst_167 = arith.constant dense<0.000000e+00> : vector<2xf32>
    %345 = vector.multi_reduction <add>, %344, %cst_167 [1] : vector<2x128xf32> to vector<2xf32>
    %346 = vector.shape_cast %345 : vector<2xf32> to vector<2x1xf32>
    %347 = tpu.reciprocal %346 {approx = true} : vector<2x1xf32> -> vector<2x1xf32>
    %348 = vector.broadcast %347 : vector<2x1xf32> to vector<2x128xf32>
    %349 = arith.mulf %344, %348 : vector<2x128xf32>
    %350 = vector.shape_cast %349 : vector<2x128xf32> to vector<2x1x128xf32>
    %351 = vector.broadcast %350 : vector<2x1x128xf32> to vector<2x16x128xf32>
    %352 = arith.mulf %351, %285 : vector<2x16x128xf32>
    %cst_168 = arith.constant dense<0.000000e+00> : vector<2x16xf32>
    %353 = vector.multi_reduction <add>, %352, %cst_168 [2] : vector<2x16x128xf32> to vector<2x16xf32>
    %354 = arith.mulf %353, %353 : vector<2x16xf32>
    %cst_169 = arith.constant dense<0.000000e+00> : vector<2xf32>
    %355 = vector.multi_reduction <add>, %354, %cst_169 [1] : vector<2x16xf32> to vector<2xf32>
    %356 = vector.shape_cast %355 : vector<2xf32> to vector<2x1xf32>
    %cst_170 = arith.constant 1.000000e+00 : f32
    %357 = vector.broadcast %cst_170 : f32 to vector<2x1xf32>
    %358 = arith.addf %357, %356 : vector<2x1xf32>
    %359 = arith.divf %356, %358 : vector<2x1xf32>
    %360 = vector.broadcast %359 : vector<2x1xf32> to vector<2x16xf32>
    %361 = arith.mulf %360, %353 : vector<2x16xf32>
    %cst_171 = arith.constant 9.99999996E-13 : f32
    %362 = vector.broadcast %cst_171 : f32 to vector<2x1xf32>
    %363 = arith.addf %356, %362 : vector<2x1xf32>
    %364 = math.rsqrt %363 : vector<2x1xf32>
    %365 = vector.broadcast %364 : vector<2x1xf32> to vector<2x16xf32>
    %366 = arith.mulf %361, %365 : vector<2x16xf32>
    %c0_172 = arith.constant 0 : index
    %c1_173 = arith.constant 1 : index
    %c0_174 = arith.constant 0 : index
    %367 = vector.load %arg8[%c0_172, %c1_173, %c0_174] : memref<2x2x16xf32, #tpu.memory_space<vmem>>, vector<2x1x16xf32>
    %368 = vector.shape_cast %367 : vector<2x1x16xf32> to vector<2x16xf32>
    %369 = vector.shape_cast %366 : vector<2x16xf32> to vector<2x1x16xf32>
    tpu.vector_store %arg8[%c0_172, %c1_173, %c0_174], %369 {strides = array<i32>} : memref<2x2x16xf32, #tpu.memory_space<vmem>>, vector<2x1x16xf32>,
    %370 = arith.mulf %200, %200 : vector<2x16xf32>
    %cst_175 = arith.constant dense<0.000000e+00> : vector<2xf32>
    %371 = vector.multi_reduction <add>, %370, %cst_175 [1] : vector<2x16xf32> to vector<2xf32>
    %372 = vector.shape_cast %371 : vector<2xf32> to vector<2x1xf32>
    %373 = arith.mulf %366, %366 : vector<2x16xf32>
    %cst_176 = arith.constant dense<0.000000e+00> : vector<2xf32>
    %374 = vector.multi_reduction <add>, %373, %cst_176 [1] : vector<2x16xf32> to vector<2xf32>
    %375 = vector.shape_cast %374 : vector<2xf32> to vector<2x1xf32>
    %376 = tpu.concatenate %372, %375 in 1 : vector<2x1xf32>, vector<2x1xf32> -> vector<2x2xf32>
    %cst_177 = arith.constant dense<0xFF800000> : vector<2xf32>
    %377 = vector.multi_reduction <maximumf>, %376, %cst_177 [1] : vector<2x2xf32> to vector<2xf32>
    %378 = vector.shape_cast %377 : vector<2xf32> to vector<2x1xf32>
    %379 = tpu.iota {dimensions = array<i32: 1>} : vector<2x2xi32>
    %380 = vector.broadcast %378 : vector<2x1xf32> to vector<2x2xf32>
    %381 = arith.cmpf oge, %376, %380 : vector<2x2xf32>
    %c2_i32 = arith.constant 2 : i32
    %382 = vector.broadcast %c2_i32 : i32 to vector<2x2xi32>
    %383 = arith.select %381, %379, %382 : vector<2x2xi1>, vector<2x2xi32>
    %cst_178 = arith.constant dense<2147483647> : vector<2xi32>
    %384 = vector.multi_reduction <minsi>, %383, %cst_178 [1] : vector<2x2xi32> to vector<2xi32>
    %385 = vector.shape_cast %384 : vector<2xi32> to vector<2x1xi32>
    %386 = vector.broadcast %385 : vector<2x1xi32> to vector<2x2xi32>
    %387 = arith.cmpi eq, %379, %386 : vector<2x2xi32>
    %388 = arith.extui %387 : vector<2x2xi1> to vector<2x2xi32>
    %389 = arith.sitofp %388 : vector<2x2xi32> to vector<2x2xf32>
    %c0_179 = arith.constant 0 : index
    %c0_180 = arith.constant 0 : index
    %390 = vector.load %arg10[%c0_179, %c0_180] : memref<2x2xf32, #tpu.memory_space<vmem>>, vector<2x2xf32>
    tpu.vector_store %arg10[%c0_179, %c0_180], %389 {strides = array<i32>} : memref<2x2xf32, #tpu.memory_space<vmem>>, vector<2x2xf32>,
    %cst_181 = arith.constant 0.000000e+00 : f32
    %391 = vector.broadcast %cst_181 : f32 to vector<2x32xf32>
    %392 = vector.extract_strided_slice %389 {offsets = [0, 0], sizes = [2, 1], strides = [1, 1]} : vector<2x2xf32> to vector<2x1xf32>
    %393 = vector.broadcast %392 : vector<2x1xf32> to vector<2x16xf32>
    %394 = arith.mulf %200, %393 : vector<2x16xf32>
    %c0_182 = arith.constant 0 : index
    %c0_183 = arith.constant 0 : index
    %395 = vector.load %arg2[%c0_182, %c0_183] : memref<32x32xf32, #tpu.memory_space<vmem>>, vector<16x32xf32>
    %cst_184 = arith.constant dense<0.000000e+00> : vector<2x32xf32>
    %396 = tpu.matmul %394, %395, %cst_184 {dimension_numbers = #tpu.dot_dimension_numbers<[1], [0], [0], [1], [0, 0, 1, 1], [], []>} : vector<2x16xf32>, vector<16x32xf32>, vector<2x32xf32> -> vector<2x32xf32>
    %397 = arith.addf %391, %396 : vector<2x32xf32>
    %398 = vector.extract_strided_slice %389 {offsets = [0, 1], sizes = [2, 1], strides = [1, 1]} : vector<2x2xf32> to vector<2x1xf32>
    %399 = vector.broadcast %398 : vector<2x1xf32> to vector<2x16xf32>
    %400 = arith.mulf %366, %399 : vector<2x16xf32>
    %c16 = arith.constant 16 : index
    %c0_185 = arith.constant 0 : index
    %401 = vector.load %arg2[%c16, %c0_185] : memref<32x32xf32, #tpu.memory_space<vmem>>, vector<16x32xf32>
    %cst_186 = arith.constant dense<0.000000e+00> : vector<2x32xf32>
    %402 = tpu.matmul %400, %401, %cst_186 {dimension_numbers = #tpu.dot_dimension_numbers<[1], [0], [0], [1], [0, 0, 1, 1], [], []>} : vector<2x16xf32>, vector<16x32xf32>, vector<2x32xf32> -> vector<2x32xf32>
    %403 = arith.addf %397, %402 : vector<2x32xf32>
    %c0_187 = arith.constant 0 : index
    %c0_188 = arith.constant 0 : index
    %404 = vector.load %arg3[%c0_187, %c0_188] : memref<1x32xf32, #tpu.memory_space<vmem>>, vector<1x32xf32>
    %405 = vector.broadcast %404 : vector<1x32xf32> to vector<2x32xf32>
    %406 = arith.addf %403, %405 : vector<2x32xf32>
    %cst_189 = arith.constant 0.000000e+00 : f32
    %407 = vector.broadcast %cst_189 : f32 to vector<2x32xf32>
    %408 = arith.maximumf %406, %407 : vector<2x32xf32>
    %c0_190 = arith.constant 0 : index
    %c0_191 = arith.constant 0 : index
    %409 = vector.load %arg4[%c0_190, %c0_191] : memref<32x64xf32, #tpu.memory_space<vmem>>, vector<32x64xf32>
    %cst_192 = arith.constant dense<0.000000e+00> : vector<2x64xf32>
    %410 = tpu.matmul %408, %409, %cst_192 {dimension_numbers = #tpu.dot_dimension_numbers<[1], [0], [0], [1], [0, 0, 1, 1], [], []>} : vector<2x32xf32>, vector<32x64xf32>, vector<2x64xf32> -> vector<2x64xf32>
    %c0_193 = arith.constant 0 : index
    %c0_194 = arith.constant 0 : index
    %411 = vector.load %arg5[%c0_193, %c0_194] : memref<1x64xf32, #tpu.memory_space<vmem>>, vector<1x64xf32>
    %412 = vector.broadcast %411 : vector<1x64xf32> to vector<2x64xf32>
    %413 = arith.addf %410, %412 : vector<2x64xf32>
    %cst_195 = arith.constant 0.000000e+00 : f32
    %414 = vector.broadcast %cst_195 : f32 to vector<2x64xf32>
    %415 = arith.maximumf %413, %414 : vector<2x64xf32>
    %c0_196 = arith.constant 0 : index
    %c0_197 = arith.constant 0 : index
    %416 = vector.load %arg6[%c0_196, %c0_197] : memref<64x256xf32, #tpu.memory_space<vmem>>, vector<64x256xf32>
    %cst_198 = arith.constant dense<0.000000e+00> : vector<2x256xf32>
    %417 = tpu.matmul %415, %416, %cst_198 {dimension_numbers = #tpu.dot_dimension_numbers<[1], [0], [0], [1], [0, 0, 1, 1], [], []>} : vector<2x64xf32>, vector<64x256xf32>, vector<2x256xf32> -> vector<2x256xf32>
    %c0_199 = arith.constant 0 : index
    %c0_200 = arith.constant 0 : index
    %418 = vector.load %arg7[%c0_199, %c0_200] : memref<1x256xf32, #tpu.memory_space<vmem>>, vector<1x256xf32>
    %419 = vector.broadcast %418 : vector<1x256xf32> to vector<2x256xf32>
    %420 = arith.addf %417, %419 : vector<2x256xf32>
    %cst_201 = arith.constant 0.000000e+00 : f32
    %421 = vector.broadcast %cst_201 : f32 to vector<2x256xf32>
    %422 = arith.subf %421, %420 : vector<2x256xf32>
    %423 = math.exp %422 : vector<2x256xf32>
    %cst_202 = arith.constant 1.000000e+00 : f32
    %424 = vector.broadcast %cst_202 : f32 to vector<2x256xf32>
    %425 = arith.addf %424, %423 : vector<2x256xf32>
    %426 = tpu.reciprocal %425 {approx = true} : vector<2x256xf32> -> vector<2x256xf32>
    %c0_203 = arith.constant 0 : index
    %c0_204 = arith.constant 0 : index
    %427 = vector.load %arg9[%c0_203, %c0_204] : memref<2x256xf32, #tpu.memory_space<vmem>>, vector<2x256xf32>
    tpu.vector_store %arg9[%c0_203, %c0_204], %426 {strides = array<i32>} : memref<2x256xf32, #tpu.memory_space<vmem>>, vector<2x256xf32>,
    return
  }
}

</mosaic_0001>

<bundles_post_ra>
// kernel: capsule_network_forward.3
= control target key start
LH: loop header
LB: loop body
LE: loop exit
PB: predicated region body
PF: predicated region fallthrough
CT: control target
= control target key end

     0   :  { %s485_s12 = smov 0   ;;  %s487_s13 = smov 0   ;;  %s557_s0 = inlined_call_operand.vmem [shape: f32[16,32], index: 0, kind: input, shape index: {}]   ;;  %s558_s1 = inlined_call_operand.vmem [shape: f32[16,1], index: 1, kind: input, shape index: {}]   ;;  %s559_s2 = inlined_call_operand.vmem [shape: f32[32,384], index: 2, kind: input, shape index: {}]   ;;  %s560_s3 = inlined_call_operand.vmem [shape: f32[16,384], index: 3, kind: output, shape index: {}]  }
   0x1   :  { %s489_s14 = smov 0  }
   0x2 LB: > { %s385_s15 = sadd.s32 4294967295, %s460_s14   ;;  %s502_s16 = sadd.s32 1, %s460_s14   ;;  %s460_s14 = sphi %s489_s14, %s564_s14   ;;  %s456_s13 = sphi %s487_s13, %s563_s13   ;;  %s452_s12 = sphi %s485_s12, %s562_s12  }
   0x3   : > { %s59_s17 = ssub.s32 %s460_s14, %s502_s16  ;;  %s62_s18 = sadd.s32 1, %s456_s13 }
   0x4   : > { %p60_p0 = scmp.eq.s32.totalorder %s59_s17, 0  ;;  %p69_p1 = scmp.ne.s32.totalorder %s456_s13, %s452_s12 }
   0x5   : > { %p70_p2 = scmp.eq.s32.totalorder %s460_s14, 0  ;;  %p99_p3 = scmp.eq.s32.totalorder %s385_s15, 2 }
   0x6   : > { %s513_s19 = scalar_select %p60_p0, %s456_s13, %s62_s18  }
   0x7   : > { %p71_p4 = por %p70_p2, %p69_p1  ;;  %p515_p5 = por %p99_p3, %p69_p1 }
   0x8   : > { %p388_p6 = scmp.ge.s32.totalorder %s460_s14, 3 }
   0xa   : > { %127 = sbr.rel (%p388_p6) target bundleno = 21 (0x15), region = 24 }
   0xf   : > { %130 = sbr.rel (!%p71_p4) target bundleno = 21 (0x15), region = 28  ;;  %s132_s21 = sand.u32 (%p71_p4), 1, %s456_s13  }
  0x10   : > { %s390_s22 = sshll.u32 (%p71_p4), %s460_s14, 3  ;;  %s389_s23 = sshll.u32 (%p71_p4), %s132_s21, 5 }
  0x11   : > { %s136_s26 = scalar_lea.vmem (%p71_p4), %s559_s2, %s390_s22  ;;  %s134_s27 = scalar_lea.vmem (%p71_p4), [#allocation2], %s389_s23 }
  0x12   : > { %v171_v0 = vld [vmem:[%s136_s26] sm:$0xff] (%p71_p4)  ;;  %v173_v1 = vld [vmem:[%s136_s26 + $0x18] sm:$0xff] (%p71_p4)  ;;  %v175_v2 = vld [vmem:[%s136_s26 + $0x30] sm:$0xff] (%p71_p4) }
  0x13   : > { %172 = vst [vmem:[%s134_s27] sm:$0xff] (%p71_p4), %v171_v0  ;;  %174 = vst [vmem:[%s134_s27 + $0x8] sm:$0xff] (%p71_p4), %v173_v1  ;;  %v177_v3 = vld [vmem:[%s136_s26 + $0x48] sm:$0xff] (%p71_p4) }
  0x14   : > { %176 = vst [vmem:[%s134_s27 + $0x10] sm:$0xff] %v175_v2  ;;  %178 = vst [vmem:[%s134_s27 + $0x18] sm:$0xff] %v177_v3 }
  0x15 PF: > { %p391_p7 = scmp.ge.s32.totalorder %s460_s14, 1  ;;  %p183_p8 = scmp.lt.s32.totalorder %s460_s14, 4 }
  0x17   : > { %p184_p9 = pnand %p391_p7, %p183_p8 }
  0x18   : > { %s190_s28 = sand.u32 (!%p184_p9), 1, %s452_s12  }
  0x19   : > { %187 = sbr.rel (%p184_p9) target bundleno = 250 (0xfa), region = 66  ;;  %s392_s29 = sshll.u32 (!%p184_p9), %s190_s28, 5 }
  0x1a   : > { %s192_s5 = scalar_lea.vmem (!%p184_p9), [#allocation2], %s392_s29  ;;  %s393_s12 = sshll.u32 (!%p184_p9), %s190_s28, 4 }
  0x1b   : > { %s211_s17 = scalar_lea.vmem (!%p184_p9), [#allocation3], %s393_s12 }
  0x1e   : > { %v462_v4 = vmov 0.0   ;;  %vm463_vm0 = vmmov 0   ;;  %v222_v5 = vld [vmem:[%s558_s1] sm:$0xff]  ;;  %v464_v6 = vmov 0   ;;  %v218_v7 = vld [vmem:[%s192_s5 + $0x10] sm:$0xff]  ;;  %v219_v8 = vld [vmem:[%s192_s5 + $0x18] sm:$0xff] }
  0x1f   : > { %402 = vmatprep.subr.bf16.mxu0 %v462_v4  ;;  %406 = vmatprep.mubr.msk.bf16.mxu0 %vm463_vm0, %v462_v4  ;;  %v216_v9 = vld [vmem:[%s192_s5] sm:$0xff]  ;;  %v221_v10 = vpack.c.bf16 %v219_v8, %v218_v7  ;;  %v217_v11 = vld [vmem:[%s192_s5 + $0x8] sm:$0xff]  ;;  %vm234_vm1 = vcmask 261120   ;;  %s396_s18 = sshll.u32 (%p515_p5), %s385_s15, 3 }
  0x20   : > { %437 = vset.pattern.permute.xlu0 %v464_v6  ;;  %v223_v12 = vld [vmem:[%s558_s1 + $0x8] sm:$0xff]  ;;  %v220_v13 = vpack.c.bf16 %v217_v11, %v216_v9  ;;  %v213_v14 = vld [vmem:[%s557_s0] sm:$0xff]  ;;  %s291_s23 = scalar_lea.vmem (%p515_p5), %s560_s3, %s396_s18 }
  0x21   : > { %226 = vperm.xlu0 %437, %v222_v5   ;;  %403 = vmatpush3.bf16.msra.mxu0 %v221_v10  ;;  %v214_v15 = vld [vmem:[%s557_s0 + $0x8] sm:$0xff] }
  0x22   : > { %404 = vmatprep.subr.bf16.mxu0 %v462_v4  ;;  %v215_v16 = vpack.c.bf16 %v214_v15, %v213_v14 }
  0x25   : > { %231 = vperm.xlu0 %437, %v223_v12   ;;  %405 = vmatpush3.bf16.msra.mxu0 %v220_v13 }
  0x28   : > { %407 = vmatmul.mubr.msk.bf16.vlgmr.msra.gmra.mxu0 %vm234_vm1, %v215_v16 }
  0x9c   : > { %v227_v17 = vpop.permute.xlu0 %226 }
  0xa0   : > { %v232_v22 = vpop.permute.xlu0 %231 }
  0xe8   : > { %v272_v18 = vpop.f32.mrf.mxu0 }
  0xe9   : > { %v273_v19 = vadd.f32 %v272_v18, %v227_v17 }
  0xea   : > { %v408_v20 = vpop.f32.mrf.mxu0 }
  0xeb   : > { %v279_v21 = vmax.f32 %v273_v19, 0.0 }
  0xec   : > { %v275_v23 = vpop.f32.mrf.mxu0 }
  0xed   : > { %281 = vst [vmem:[%s211_s17] sm:$0xff] %v279_v21  ;;  %v276_v24 = vadd.f32 %v275_v23, %v232_v22  ;;  %289 = sbr.rel (!%p515_p5) target bundleno = 250 (0xfa), region = 74 }
  0xee   : > { %v409_v25 = vpop.f32.mrf.mxu0 }
  0xef   : > { %v280_v26 = vmax.f32 %v276_v24, 0.0 }
  0xf1   : > { %282 = vst [vmem:[%s211_s17 + $0x8] sm:$0xff] %v280_v26 }
  0xf4   : > { %v322_v27 = vld [vmem:[%s211_s17] sm:$0xff] }
  0xf5   : > { %323 = vst [vmem:[%s291_s23] sm:$0xff] %v322_v27 }
  0xf8   : > { %v324_v28 = vld [vmem:[%s211_s17 + $0x8] sm:$0xff] }
  0xf9   : > { %325 = vst [vmem:[%s291_s23 + $0x18] sm:$0xff] %v324_v28 }
  0xfa PF: > { %p10_p10 = scmp.ge.s32.totalorder %s502_s16, 5   ;;  %s562_s12 = smov %s456_s13 }
  0xfb   : > { %s563_s13 = smov %s513_s19  ;;  %s564_s14 = smov %s502_s16 }
  0xfc   :  { %12 = sbr.rel (!%p10_p10) target bundleno = 2 (0x2), region = 143 }

// kernel: capsule_network_forward.4
= control target key start
LH: loop header
LB: loop body
LE: loop exit
PB: predicated region body
PF: predicated region fallthrough
CT: control target
= control target key end

     0   :  { %v389_v0 = vmov 0   ;;  %vm186_vm0 = vcmask 130048   ;;  %vm329_vm1 = vcmask 261120   ;;  %s727_s2 = inlined_call_operand.vmem [shape: f32[400,32], index: 2, kind: input, shape index: {}]   ;;  %s728_s0 = inlined_call_operand.vmem [shape: f32[64,400], index: 0, kind: input, shape index: {}]   ;;  %s729_s1 = inlined_call_operand.vmem [shape: f32[64,1], index: 1, kind: input, shape index: {}]   ;;  %s730_s3 = inlined_call_operand.vmem [shape: f32[64,32], index: 3, kind: output, shape index: {}]  }
   0x1   :  { %264 = vmatprep.subr.bf16.mxu1 %v389_v0  ;;  %v93_v1 = vld [vmem:[%s727_s2 + $0xf0] sm:$0xff]  ;;  %v94_v2 = vld [vmem:[%s727_s2 + $0xf8] sm:$0xff]  ;;  %387 = vset.pattern.permute.xlu0 %v389_v0  ;;  %v91_v10 = vld [vmem:[%s727_s2 + $0xe0] sm:$0xff] }
   0x2   :  { %v109_v3 = vld [vmem:[%s727_s2 + $0x170] sm:$0xff]  ;;  %v128_v4 = vpack.c.bf16 %v94_v2, %v93_v1  ;;  %v110_v5 = vld [vmem:[%s727_s2 + $0x178] sm:$0xff]  ;;  %388 = vset.pattern.permute.xlu1 %v389_v0  ;;  %v92_v11 = vld [vmem:[%s727_s2 + $0xe8] sm:$0xff] }
   0x3   :  { %v77_v6 = vld [vmem:[%s727_s2 + $0x70] sm:$0xff]  ;;  %v78_v7 = vld [vmem:[%s727_s2 + $0x78] sm:$0xff]  ;;  %v136_v8 = vpack.c.bf16 %v110_v5, %v109_v3  ;;  %v107_v12 = vld [vmem:[%s727_s2 + $0x160] sm:$0xff]  ;;  %v127_v13 = vpack.c.bf16 %v92_v11, %v91_v10 }
   0x4   :  { %v120_v9 = vpack.c.bf16 %v78_v7, %v77_v6  ;;  %346 = vmatprep.subr.bf16.mxu0 %v128_v4  ;;  %v108_v14 = vld [vmem:[%s727_s2 + $0x168] sm:$0xff]  ;;  %v75_v15 = vld [vmem:[%s727_s2 + $0x60] sm:$0xff]  ;;  %v89_v19 = vld [vmem:[%s727_s2 + $0xd0] sm:$0xff] }
   0x5   :  { %v76_v16 = vld [vmem:[%s727_s2 + $0x68] sm:$0xff]  ;;  %265 = vmatpush1.bf16.msra.mxu1 %v136_v8  ;;  %v135_v17 = vpack.c.bf16 %v108_v14, %v107_v12  ;;  %v90_v20 = vld [vmem:[%s727_s2 + $0xd8] sm:$0xff]  ;;  %v105_v21 = vld [vmem:[%s727_s2 + $0x150] sm:$0xff] }
   0x6   :  { %347 = vmatpush3.bf16.msra.mxu0 %v120_v9  ;;  %v119_v18 = vpack.c.bf16 %v76_v16, %v75_v15  ;;  %266 = vmatprep.subr.bf16.mxu1 %v389_v0  ;;  %v126_v22 = vpack.c.bf16 %v90_v20, %v89_v19  ;;  %v106_v23 = vld [vmem:[%s727_s2 + $0x158] sm:$0xff]  ;;  %v73_v24 = vld [vmem:[%s727_s2 + $0x50] sm:$0xff]  ;;  %v87_v26 = vld [vmem:[%s727_s2 + $0xc0] sm:$0xff] }
   0x7   :  { %348 = vmatprep.subr.bf16.mxu0 %v127_v13  ;;  %v74_v25 = vld [vmem:[%s727_s2 + $0x58] sm:$0xff]  ;;  %v88_v27 = vld [vmem:[%s727_s2 + $0xc8] sm:$0xff]  ;;  %v134_v28 = vpack.c.bf16 %v106_v23, %v105_v21  ;;  %v103_v30 = vld [vmem:[%s727_s2 + $0x140] sm:$0xff] }
   0x8   :  { %v118_v29 = vpack.c.bf16 %v74_v25, %v73_v24  ;;  %v125_v31 = vpack.c.bf16 %v88_v27, %v87_v26  ;;  %v104_v32 = vld [vmem:[%s727_s2 + $0x148] sm:$0xff]  ;;  %v71_v33 = vld [vmem:[%s727_s2 + $0x40] sm:$0xff]  ;;  %v85_v35 = vld [vmem:[%s727_s2 + $0xb0] sm:$0xff] }
   0x9   :  { %267 = vmatpush1.bf16.msra.mxu1 %v135_v17  ;;  %v72_v34 = vld [vmem:[%s727_s2 + $0x48] sm:$0xff]  ;;  %v86_v36 = vld [vmem:[%s727_s2 + $0xb8] sm:$0xff]  ;;  %v133_v37 = vpack.c.bf16 %v104_v32, %v103_v30  ;;  %v101_v39 = vld [vmem:[%s727_s2 + $0x130] sm:$0xff] }
   0xa   :  { %349 = vmatpush3.bf16.msra.mxu0 %v119_v18  ;;  %268 = vmatprep.subr.bf16.mxu1 %v389_v0  ;;  %v117_v38 = vpack.c.bf16 %v72_v34, %v71_v33  ;;  %v124_v40 = vpack.c.bf16 %v86_v36, %v85_v35  ;;  %v102_v41 = vld [vmem:[%s727_s2 + $0x138] sm:$0xff]  ;;  %v69_v42 = vld [vmem:[%s727_s2 + $0x30] sm:$0xff]  ;;  %v83_v44 = vld [vmem:[%s727_s2 + $0xa0] sm:$0xff] }
   0xb   :  { %350 = vmatprep.subr.bf16.mxu0 %v126_v22  ;;  %v70_v43 = vld [vmem:[%s727_s2 + $0x38] sm:$0xff]  ;;  %v84_v45 = vld [vmem:[%s727_s2 + $0xa8] sm:$0xff]  ;;  %v99_v46 = vld [vmem:[%s727_s2 + $0x120] sm:$0xff]  ;;  %v132_v47 = vpack.c.bf16 %v102_v41, %v101_v39 }
   0xc   :  { %v116_v48 = vpack.c.bf16 %v70_v43, %v69_v42  ;;  %v100_v49 = vld [vmem:[%s727_s2 + $0x128] sm:$0xff]  ;;  %v123_v52 = vpack.c.bf16 %v84_v45, %v83_v44  ;;  %v67_v53 = vld [vmem:[%s727_s2 + $0x20] sm:$0xff]  ;;  %v81_v55 = vld [vmem:[%s727_s2 + $0x90] sm:$0xff] }
   0xd   :  { %269 = vmatpush1.bf16.msra.mxu1 %v134_v28  ;;  %v16_v50 = vld [vmem:[%s728_s0 + $0x8] sm:$0xff]  ;;  %v82_v57 = vld [vmem:[%s727_s2 + $0x98] sm:$0xff]  ;;  %v131_v61 = vpack.c.bf16 %v100_v49, %v99_v46  ;;  %v97_v63 = vld [vmem:[%s727_s2 + $0x110] sm:$0xff] }
   0xe   :  { %351 = vmatpush3.bf16.msra.mxu0 %v118_v29  ;;  %270 = vmatprep.subr.bf16.mxu1 %v389_v0  ;;  %v20_v51 = vld [vmem:[%s728_s0 + $0x28] sm:$0xff]  ;;  %v18_v58 = vld [vmem:[%s728_s0 + $0x18] sm:$0xff]  ;;  %v122_v1 = vpack.c.bf16 %v82_v57, %v81_v55  ;;  %v65_v3 = vld [vmem:[%s727_s2 + $0x10] sm:$0xff] }
   0xf   :  { %352 = vmatprep.subr.bf16.mxu0 %v125_v31  ;;  %v68_v54 = vld [vmem:[%s727_s2 + $0x28] sm:$0xff]  ;;  %v48_v56 = vpack.c.bf16 %v20_v51, %v16_v50  ;;  %v22_v59 = vld [vmem:[%s728_s0 + $0x38] sm:$0xff]  ;;  %v79_v5 = vld [vmem:[%s727_s2 + $0x80] sm:$0xff] }
  0x10   :  { %v50_v60 = vpack.c.bf16 %v22_v59, %v18_v58  ;;  %v115_v62 = vpack.c.bf16 %v68_v54, %v67_v53  ;;  %v98_v2 = vld [vmem:[%s727_s2 + $0x118] sm:$0xff]  ;;  %v80_v6 = vld [vmem:[%s727_s2 + $0x88] sm:$0xff]  ;;  %v95_v9 = vld [vmem:[%s727_s2 + $0x100] sm:$0xff] }
  0x11   :  { %271 = vmatpush1.bf16.msra.mxu1 %v133_v37  ;;  %231 = vmatprep.mubr.bf16.mxu0 %v48_v56  ;;  %v66_v4 = vld [vmem:[%s727_s2 + $0x18] sm:$0xff]  ;;  %v130_v7 = vpack.c.bf16 %v98_v2, %v97_v63  ;;  %v121_v10 = vpack.c.bf16 %v80_v6, %v79_v5  ;;  %v96_v11 = vld [vmem:[%s727_s2 + $0x108] sm:$0xff]  ;;  %v63_v12 = vld [vmem:[%s727_s2] sm:$0xff] }
  0x12   :  { %353 = vmatpush3.bf16.msra.mxu0 %v117_v38  ;;  %272 = vmatprep.subr.bf16.mxu1 %v389_v0  ;;  %v114_v8 = vpack.c.bf16 %v66_v4, %v65_v3  ;;  %v64_v13 = vld [vmem:[%s727_s2 + $0x8] sm:$0xff]  ;;  %v138_v14 = vld [vmem:[%s729_s1] sm:$0xff]  ;;  %v140_v15 = vld [vmem:[%s729_s1 + $0x10] sm:$0xff]  ;;  %v129_v16 = vpack.c.bf16 %v96_v11, %v95_v9 }
  0x13   :  { %354 = vmatprep.subr.bf16.mxu0 %v124_v40  ;;  %342 = vmatprep.mubr.msk.bf16.mxu1 %vm186_vm0, %v50_v60  ;;  %v113_v17 = vpack.c.bf16 %v64_v13, %v63_v12  ;;  %v15_v18 = vld [vmem:[%s728_s0] sm:$0xff]  ;;  %v112_v21 = vld [vmem:[%s727_s2 + $0x188] sm:$0xff]  ;;  %v141_v26 = vld [vmem:[%s729_s1 + $0x18] sm:$0xff] }
  0x14   :  { %v19_v19 = vld [vmem:[%s728_s0 + $0x20] sm:$0xff]  ;;  %v24_v22 = vld [vmem:[%s728_s0 + $0x48] sm:$0xff]  ;;  %148 = vperm.xlu0 %387, %v138_v14   ;;  %158 = vperm.xlu1 %388, %v140_v15   ;;  %v17_v28 = vld [vmem:[%s728_s0 + $0x10] sm:$0xff] }
  0x15   :  { %273 = vmatpush1.bf16.msra.mxu1 %v132_v47  ;;  %v111_v20 = vld [vmem:[%s727_s2 + $0x180] sm:$0xff]  ;;  %v28_v23 = vld [vmem:[%s728_s0 + $0x68] sm:$0xff]  ;;  %v47_v24 = vpack.c.bf16 %v19_v19, %v15_v18  ;;  %v21_v29 = vld [vmem:[%s728_s0 + $0x30] sm:$0xff] }
  0x16   :  { %355 = vmatpush3.bf16.msra.mxu0 %v116_v48  ;;  %274 = vmatprep.subr.bf16.mxu1 %v389_v0  ;;  %v139_v25 = vld [vmem:[%s729_s1 + $0x8] sm:$0xff]  ;;  %v137_v27 = vpack.c.bf16 %v112_v21, %v111_v20  ;;  %v52_v30 = vpack.c.bf16 %v28_v23, %v24_v22  ;;  %v26_v31 = vld [vmem:[%s728_s0 + $0x58] sm:$0xff]  ;;  %v49_v33 = vpack.c.bf16 %v21_v29, %v17_v28  ;;  %v23_v35 = vld [vmem:[%s728_s0 + $0x40] sm:$0xff] }
  0x17   :  { %356 = vmatprep.subr.bf16.mxu0 %v123_v52  ;;  %v30_v32 = vld [vmem:[%s728_s0 + $0x78] sm:$0xff]  ;;  %v143_v34 = vld [vmem:[%s729_s1 + $0x28] sm:$0xff]  ;;  %v27_v36 = vld [vmem:[%s728_s0 + $0x60] sm:$0xff] }
  0x18   :  { %153 = vperm.xlu0 %387, %v139_v25   ;;  %163 = vperm.xlu1 %388, %v141_v26   ;;  %v54_v37 = vpack.c.bf16 %v30_v32, %v26_v31  ;;  %v32_v38 = vld [vmem:[%s728_s0 + $0x88] sm:$0xff]  ;;  %v51_v40 = vpack.c.bf16 %v27_v36, %v23_v35  ;;  %v145_v41 = vld [vmem:[%s729_s1 + $0x38] sm:$0xff]  ;;  %v144_v42 = vld [vmem:[%s729_s1 + $0x30] sm:$0xff] }
  0x19   :  { %275 = vmatpush1.bf16.msra.mxu1 %v131_v61  ;;  %v36_v39 = vld [vmem:[%s728_s0 + $0xa8] sm:$0xff]  ;;  %v25_v43 = vld [vmem:[%s728_s0 + $0x50] sm:$0xff]  ;;  %v34_v46 = vld [vmem:[%s728_s0 + $0x98] sm:$0xff] }
  0x1a   :  { %357 = vmatpush3.bf16.msra.mxu0 %v115_v62  ;;  %276 = vmatprep.subr.bf16.mxu1 %v389_v0  ;;  %v29_v44 = vld [vmem:[%s728_s0 + $0x70] sm:$0xff]  ;;  %v56_v45 = vpack.c.bf16 %v36_v39, %v32_v38  ;;  %v38_v47 = vld [vmem:[%s728_s0 + $0xb8] sm:$0xff]  ;;  %v31_v49 = vld [vmem:[%s728_s0 + $0x80] sm:$0xff] }
  0x1b   :  { %358 = vmatprep.subr.bf16.mxu0 %v122_v1  ;;  %v53_v48 = vpack.c.bf16 %v29_v44, %v25_v43  ;;  %v35_v50 = vld [vmem:[%s728_s0 + $0xa0] sm:$0xff]  ;;  %v58_v51 = vpack.c.bf16 %v38_v47, %v34_v46  ;;  %v40_v52 = vld [vmem:[%s728_s0 + $0xc8] sm:$0xff]  ;;  %v33_v55 = vld [vmem:[%s728_s0 + $0x90] sm:$0xff] }
  0x1c   :  { %173 = vperm.xlu1 %388, %v143_v34   ;;  %v44_v53 = vld [vmem:[%s728_s0 + $0xe8] sm:$0xff]  ;;  %v55_v54 = vpack.c.bf16 %v35_v50, %v31_v49  ;;  %v37_v56 = vld [vmem:[%s728_s0 + $0xb0] sm:$0xff]  ;;  %v42_v58 = vld [vmem:[%s728_s0 + $0xd8] sm:$0xff] }
  0x1d   :  { %277 = vmatpush1.bf16.msra.mxu1 %v130_v7  ;;  %v60_v57 = vpack.c.bf16 %v44_v53, %v40_v52  ;;  %v46_v59 = vld [vmem:[%s728_s0 + $0xf8] sm:$0xff]  ;;  %v57_v60 = vpack.c.bf16 %v37_v56, %v33_v55  ;;  %v39_v61 = vld [vmem:[%s728_s0 + $0xc0] sm:$0xff]  ;;  %v41_v2 = vld [vmem:[%s728_s0 + $0xd0] sm:$0xff] }
  0x1e   :  { %359 = vmatpush3.bf16.msra.mxu0 %v114_v8  ;;  %278 = vmatprep.subr.bf16.mxu1 %v389_v0  ;;  %v43_v62 = vld [vmem:[%s728_s0 + $0xe0] sm:$0xff]  ;;  %v62_v63 = vpack.c.bf16 %v46_v59, %v42_v58  ;;  %v45_v3 = vld [vmem:[%s728_s0 + $0xf0] sm:$0xff] }
  0x1f   :  { %360 = vmatprep.subr.bf16.mxu0 %v121_v10  ;;  %v59_v1 = vpack.c.bf16 %v43_v62, %v39_v61  ;;  %v61_v4 = vpack.c.bf16 %v45_v3, %v41_v2 }
  0x20   :  { %183 = vperm.xlu1 %388, %v145_v41  }
  0x21   :  { %279 = vmatpush1.bf16.msra.mxu1 %v129_v16 }
  0x22   :  { %361 = vmatpush3.bf16.msra.mxu0 %v113_v17  ;;  %294 = vmatprep.subr.bf16.mxu1 %v389_v0  ;;  %v142_v0 = vld [vmem:[%s729_s1 + $0x20] sm:$0xff] }
  0x23   :  { %168 = vperm.xlu0 %387, %v142_v0  }
  0x25   :  { %232 = vmatmul.mubr.bf16.vlgmr.msra.gmra.mxu0 %v47_v24  ;;  %295 = vmatpush2.bf16.msra.mxu1 %v137_v27 }
  0x26   :  { %239 = vmatprep.mubr.bf16.mxu0 %v52_v30 }
  0x27   :  { %178 = vperm.xlu0 %387, %v144_v42  }
  0x28   :  { %297 = vmatmul.mubr.bf16.vlgmr.msra.gmra.mxu1 %v49_v33 }
  0x29   :  { %343 = vmatprep.mubr.msk.bf16.mxu1 %vm186_vm0, %v54_v37 }
  0x2d   :  { %240 = vmatmul.mubr.bf16.gmra.mxu0 %v51_v40 }
  0x2e   :  { %247 = vmatprep.mubr.bf16.mxu0 %v56_v45 }
  0x30   :  { %305 = vmatmul.mubr.bf16.gmra.mxu1 %v53_v48 }
  0x31   :  { %344 = vmatprep.mubr.msk.bf16.mxu1 %vm186_vm0, %v58_v51 }
  0x35   :  { %248 = vmatmul.mubr.bf16.gmra.mxu0 %v55_v54 }
  0x36   :  { %255 = vmatprep.mubr.bf16.mxu0 %v60_v57 }
  0x38   :  { %313 = vmatmul.mubr.bf16.gmra.mxu1 %v57_v60 }
  0x39   :  { %345 = vmatprep.mubr.msk.bf16.mxu1 %vm186_vm0, %v62_v63 }
  0x3d   :  { %256 = vmatmul.mubr.bf16.gmra.mxu0 %v59_v1 }
  0x40   :  { %321 = vmatmul.mubr.bf16.gmra.mxu1 %v61_v4 }
  0x8f   :  { %v149_v5 = vpop.permute.xlu0 %148  ;;  %v159_v19 = vpop.permute.xlu1 %158 }
  0x93   :  { %v154_v12 = vpop.permute.xlu0 %153  ;;  %v164_v31 = vpop.permute.xlu1 %163 }
  0x97   :  { %v174_v45 = vpop.permute.xlu1 %173 }
  0x9b   :  { %v184_v63 = vpop.permute.xlu1 %183 }
  0x9e   :  { %v169_v38 = vpop.permute.xlu0 %168 }
  0xa2   :  { %v179_v53 = vpop.permute.xlu0 %178 }
  0xe5   :  { %v362_v6 = vpop.f32.mrf.mxu0 }
  0xe7   :  { %v363_v7 = vpop.f32.mrf.mxu0 }
  0xe8   :  { %v364_v8 = vadd.f32 %v363_v7, %v362_v6  ;;  %v298_v9 = vpop.f32.mrf.mxu1 }
  0xe9   :  { %v365_v10 = vpop.f32.mrf.mxu0 }
  0xea   :  { %v234_v11 = vadd.f32 %v364_v8, %v149_v5  ;;  %v300_v13 = vpop.f32.mrf.mxu1 }
  0xeb   :  { %v366_v14 = vpop.f32.mrf.mxu0 }
  0xec   :  { %v299_v15 = vadd.f32 %v298_v9, %v234_v11  ;;  %v367_v16 = vadd.f32 %v366_v14, %v365_v10  ;;  %v301_v17 = vpop.f32.mrf.mxu1 }
  0xed   :  { %v368_v18 = vpop.f32.mrf.mxu0 }
  0xee   :  { %330 = vst.msk [vmem:[%s730_s3] sm:$0xff] %vm329_vm1, %v299_v15  ;;  %v237_v20 = vadd.f32 %v367_v16, %v154_v12  ;;  %v303_v21 = vpop.f32.mrf.mxu1 }
  0xef   :  { %v369_v22 = vpop.f32.mrf.mxu0 }
  0xf0   :  { %v302_v23 = vadd.f32 %v301_v17, %v237_v20  ;;  %v370_v24 = vadd.f32 %v369_v22, %v368_v18  ;;  %v306_v25 = vpop.f32.mrf.mxu1 }
  0xf1   :  { %v371_v26 = vpop.f32.mrf.mxu0 }
  0xf2   :  { %331 = vst.msk [vmem:[%s730_s3 + $0x8] sm:$0xff] %vm329_vm1, %v302_v23  ;;  %v242_v27 = vadd.f32 %v370_v24, %v159_v19  ;;  %v308_v28 = vpop.f32.mrf.mxu1 }
  0xf3   :  { %v372_v29 = vpop.f32.mrf.mxu0 }
  0xf4   :  { %v307_v30 = vadd.f32 %v306_v25, %v242_v27  ;;  %v373_v32 = vadd.f32 %v372_v29, %v371_v26  ;;  %v309_v33 = vpop.f32.mrf.mxu1 }
  0xf5   :  { %v374_v34 = vpop.f32.mrf.mxu0 }
  0xf6   :  { %332 = vst.msk [vmem:[%s730_s3 + $0x10] sm:$0xff] %vm329_vm1, %v307_v30  ;;  %v245_v0 = vadd.f32 %v373_v32, %v164_v31  ;;  %v311_v35 = vpop.f32.mrf.mxu1 }
  0xf7   :  { %v375_v36 = vpop.f32.mrf.mxu0 }
  0xf8   :  { %v310_v37 = vadd.f32 %v309_v33, %v245_v0  ;;  %v376_v39 = vadd.f32 %v375_v36, %v374_v34  ;;  %v314_v40 = vpop.f32.mrf.mxu1 }
  0xf9   :  { %v377_v41 = vpop.f32.mrf.mxu0 }
  0xfa   :  { %333 = vst.msk [vmem:[%s730_s3 + $0x18] sm:$0xff] %vm329_vm1, %v310_v37  ;;  %v250_v42 = vadd.f32 %v376_v39, %v169_v38  ;;  %v316_v43 = vpop.f32.mrf.mxu1 }
  0xfb   :  { %v378_v44 = vpop.f32.mrf.mxu0 }
  0xfc   :  { %v315_v46 = vadd.f32 %v314_v40, %v250_v42  ;;  %v379_v47 = vadd.f32 %v378_v44, %v377_v41  ;;  %v317_v48 = vpop.f32.mrf.mxu1 }
  0xfd   :  { %v380_v49 = vpop.f32.mrf.mxu0 }
  0xfe   :  { %334 = vst.msk [vmem:[%s730_s3 + $0x20] sm:$0xff] %vm329_vm1, %v315_v46  ;;  %v253_v50 = vadd.f32 %v379_v47, %v174_v45  ;;  %v319_v51 = vpop.f32.mrf.mxu1 }
  0xff   :  { %v381_v52 = vpop.f32.mrf.mxu0 }
 0x100   :  { %v318_v54 = vadd.f32 %v317_v48, %v253_v50  ;;  %v382_v55 = vadd.f32 %v381_v52, %v380_v49  ;;  %v322_v56 = vpop.f32.mrf.mxu1 }
 0x101   :  { %v383_v57 = vpop.f32.mrf.mxu0 }
 0x102   :  { %335 = vst.msk [vmem:[%s730_s3 + $0x28] sm:$0xff] %vm329_vm1, %v318_v54  ;;  %v258_v58 = vadd.f32 %v382_v55, %v179_v53  ;;  %v324_v59 = vpop.f32.mrf.mxu1 }
 0x103   :  { %v384_v60 = vpop.f32.mrf.mxu0 }
 0x104   :  { %v323_v61 = vadd.f32 %v322_v56, %v258_v58  ;;  %v385_v62 = vadd.f32 %v384_v60, %v383_v57  ;;  %v325_v1 = vpop.f32.mrf.mxu1 }
 0x106   :  { %336 = vst.msk [vmem:[%s730_s3 + $0x30] sm:$0xff] %vm329_vm1, %v323_v61  ;;  %v261_v2 = vadd.f32 %v385_v62, %v184_v63  ;;  %v327_v3 = vpop.f32.mrf.mxu1 }
 0x108   :  { %v326_v4 = vadd.f32 %v325_v1, %v261_v2 }
 0x10a   :  { %337 = vst.msk [vmem:[%s730_s3 + $0x38] sm:$0xff] %vm329_vm1, %v326_v4 }

// kernel: capsule_network_forward.5
= control target key start
LH: loop header
LB: loop body
LE: loop exit
PB: predicated region body
PF: predicated region fallthrough
CT: control target
= control target key end

     0   :  { %16 = vsyncpa [#allocation3], 0  ;;  %v94_v3 = vlaneseq  ;;  %s2682_s0 = inlined_call_operand.vmem [shape: f32[2,8,128], index: 0, kind: input, shape index: {}]   ;;  %s2683_s1 = inlined_call_operand.vmem [shape: f32[2,8,16,128], index: 1, kind: input, shape index: {}]   ;;  %s2684_s2 = inlined_call_operand.vmem [shape: f32[32,32], index: 2, kind: input, shape index: {}]   ;;  %s2685_s3 = inlined_call_operand.vmem [shape: f32[1,32], index: 3, kind: input, shape index: {}]   ;;  %s2686_s4 = inlined_call_operand.vmem [shape: f32[32,64], index: 4, kind: input, shape index: {}]   ;;  %s2687_s5 = inlined_call_operand.vmem [shape: f32[1,64], index: 5, kind: input, shape index: {}]   ;;  %s2688_s6 = inlined_call_operand.vmem [shape: f32[64,256], index: 6, kind: input, shape index: {}]   ;;  %s2689_s7 = inlined_call_operand.vmem [shape: f32[1,256], index: 7, kind: input, shape index: {}]   ;;  %s2690_s8 = inlined_call_operand.hbm [shape: f32[2,2,16], index: 8, kind: output, shape index: {0}]   ;;  %s2691_s9 = inlined_call_operand.hbm [shape: f32[2,256], index: 9, kind: output, shape index: {1}]   ;;  %s2692_s10 = inlined_call_operand.hbm [shape: f32[2,2], index: 10, kind: output, shape index: {2}]  }
   0x1   :  { %v35_v0 = vld [vmem:[%s2682_s0 + $0x8] sm:$0x1]  ;;  %v39_v1 = vld [vmem:[%s2682_s0 + $0x9] sm:$0x1]  ;;  %v45_v2 = vld [vmem:[%s2682_s0 + $0xa] sm:$0x1] }
   0x2   :  { %v37_v4 = vmul.f32 %v35_v0, %v35_v0  ;;  %v41_v5 = vmul.f32 %v39_v1, %v39_v1  ;;  %v47_v6 = vmul.f32 %v45_v2, %v45_v2  ;;  %v51_v7 = vld [vmem:[%s2682_s0 + $0xb] sm:$0x1]  ;;  %v57_v8 = vld [vmem:[%s2682_s0 + $0xc] sm:$0x1]  ;;  %v2025_v9 = vshrl.u32 %v94_v3, 7  ;;  %v92_v16 = vld [vmem:[%s2683_s1] sm:$0xff] }
   0x3   :  { %v53_v11 = vmul.f32 %v51_v7, %v51_v7  ;;  %v63_v12 = vld [vmem:[%s2682_s0 + $0xd] sm:$0x1]  ;;  %v59_v15 = vmul.f32 %v57_v8, %v57_v8  ;;  %v1713_v17 = vld [vmem:[%s2683_s1 + $0x10] sm:$0xff]  ;;  %v1715_v18 = vld [vmem:[%s2683_s1 + $0x20] sm:$0xff] }
   0x4   :  { %v43_v10 = vadd.f32 %v41_v5, %v37_v4  ;;  %v2031_v13 = vsub.s32 0, %v2025_v9  ;;  %v69_v19 = vld [vmem:[%s2682_s0 + $0xe] sm:$0x1]  ;;  %v75_v20 = vld [vmem:[%s2682_s0 + $0xf] sm:$0x1]  ;;  %v65_v26 = vmul.f32 %v63_v12, %v63_v12  ;;  %v1717_v27 = vld [vmem:[%s2683_s1 + $0x30] sm:$0xff] }
   0x5   :  { %v34_v30 = vld [vmem:[%s2682_s0] sm:$0x1]  ;;  %v38_v31 = vld [vmem:[%s2682_s0 + $0x1] sm:$0x1]  ;;  %v2084_v36 = vld [vmem:[%s2683_s1 + $0x50] sm:$0xff]  ;;  %v71_v40 = vmul.f32 %v69_v19, %v69_v19  ;;  %v77_v41 = vmul.f32 %v75_v20, %v75_v20 }
   0x6   :  { %v49_v14 = vadd.f32 %v47_v6, %v43_v10  ;;  %v2049_v21 = vrot.slane %v35_v0, %v2031_v13  ;;  %v2052_v22 = vrot.slane %v39_v1, %v2031_v13  ;;  %v2055_v23 = vrot.slane %v45_v2, %v2031_v13  ;;  %v1719_v35 = vld [vmem:[%s2683_s1 + $0x40] sm:$0xff] }
   0x7   :  { %v2058_v24 = vrot.slane %v51_v7, %v2031_v13  ;;  %v2064_v28 = vrot.slane %v57_v8, %v2031_v13  ;;  %v2067_v29 = vrot.slane %v63_v12, %v2031_v13  ;;  %v2087_v37 = vrot.slane %v69_v19, %v2031_v13  ;;  %v44_v38 = vld [vmem:[%s2682_s0 + $0x2] sm:$0x1]  ;;  %v50_v43 = vld [vmem:[%s2682_s0 + $0x3] sm:$0x1]  ;;  %v56_v48 = vld [vmem:[%s2682_s0 + $0x4] sm:$0x1] }
   0x8   :  { %v55_v25 = vadd.f32 %v53_v11, %v49_v14  ;;  %v104_v32 = vmul.f32 %v2049_v21, %v92_v16  ;;  %v119_v33 = vmul.f32 %v1713_v17, %v2052_v22  ;;  %v138_v34 = vmul.f32 %v1715_v18, %v2055_v23  ;;  %v2095_v42 = vld [vmem:[%s2683_s1 + $0x60] sm:$0xff] }
   0x9   :  { %v157_v45 = vmul.f32 %v1717_v27, %v2058_v24  ;;  %v36_v46 = vmul.f32 %v34_v30, %v34_v30  ;;  %v40_v47 = vmul.f32 %v38_v31, %v38_v31  ;;  %v62_v49 = vld [vmem:[%s2682_s0 + $0x5] sm:$0x1]  ;;  %v176_v51 = vmul.f32 %v1719_v35, %v2064_v28  ;;  %v68_v0 = vld [vmem:[%s2682_s0 + $0x6] sm:$0x1]  ;;  %v74_v5 = vld [vmem:[%s2682_s0 + $0x7] sm:$0x1] }
   0xa   :  { %v61_v39 = vadd.f32 %v59_v15, %v55_v25  ;;  %v123_v44 = vadd.f32 %v119_v33, %v104_v32  ;;  %v195_v52 = vmul.f32 %v2084_v36, %v2067_v29  ;;  %v46_v53 = vmul.f32 %v44_v38, %v44_v38  ;;  %v93_v15 = vld [vmem:[%s2683_s1 + $0x8] sm:$0xff]  ;;  %v1714_v33 = vld [vmem:[%s2683_s1 + $0x18] sm:$0xff] }
   0xb   :  { %v214_v55 = vmul.f32 %v2095_v42, %v2087_v37  ;;  %v42_v56 = vadd.f32 %v40_v47, %v36_v46  ;;  %v52_v57 = vmul.f32 %v50_v43, %v50_v43  ;;  %v58_v59 = vmul.f32 %v56_v48, %v56_v48 }
   0xc   :  { %v67_v50 = vadd.f32 %v65_v26, %v61_v39  ;;  %v142_v54 = vadd.f32 %v138_v34, %v123_v44  ;;  %v64_v60 = vmul.f32 %v62_v49, %v62_v49  ;;  %v97_v61 = vrot.slane %v34_v30, %v2031_v13  ;;  %v1725_v30 = vld [vmem:[%s2683_s1 + $0x70] sm:$0xff]  ;;  %v1716_v39 = vld [vmem:[%s2683_s1 + $0x28] sm:$0xff] }
   0xd   :  { %v48_v63 = vadd.f32 %v46_v53, %v42_v56  ;;  %v112_v1 = vrot.slane %v38_v31, %v2031_v13  ;;  %v131_v2 = vrot.slane %v44_v38, %v2031_v13  ;;  %v150_v7 = vrot.slane %v50_v43, %v2031_v13  ;;  %v1718_v43 = vld [vmem:[%s2683_s1 + $0x38] sm:$0xff] }
   0xe   :  { %v73_v58 = vadd.f32 %v71_v40, %v67_v50  ;;  %v161_v62 = vadd.f32 %v157_v45, %v142_v54  ;;  %v102_v6 = vmul.f32 %v97_v61, %v92_v16  ;;  %v2125_v8 = vrot.slane %v56_v48, %v2031_v13 }
   0xf   :  { %v54_v11 = vadd.f32 %v52_v57, %v48_v63  ;;  %v117_v12 = vmul.f32 %v1713_v17, %v112_v1  ;;  %v136_v14 = vmul.f32 %v1715_v18, %v131_v2  ;;  %v2133_v26 = vrot.slane %v75_v20, %v2031_v13 }
  0x10   :  { %v2118_v4 = vadd.f32 %v77_v41, %v73_v58  ;;  %v180_v10 = vadd.f32 %v176_v51, %v161_v62  ;;  %v70_v16 = vmul.f32 %v68_v0, %v68_v0  ;;  %v76_v32 = vmul.f32 %v74_v5, %v74_v5 }
  0x11   :  { %v60_v31 = vadd.f32 %v58_v59, %v54_v11  ;;  %v121_v17 = vadd.f32 %v117_v12, %v102_v6  ;;  %v155_v18 = vmul.f32 %v1717_v27, %v150_v7  ;;  %v174_v34 = vmul.f32 %v1719_v35, %v2125_v8 }
  0x12   :  { %v81_v19 = vadd.f32 1.0, %v2118_v4  ;;  %v87_v25 = vadd.f32 1e-12, %v2118_v4  ;;  %v2143_v38 = vrot.slane %v62_v49, %v2031_v13  ;;  %v105_v20 = vmul.f32 %v2049_v21, %v93_v15  ;;  %v1720_v21 = vld [vmem:[%s2683_s1 + $0x48] sm:$0xff] }
  0x13   :  { %v199_v40 = vadd.f32 %v195_v52, %v180_v10  ;;  %v66_v41 = vadd.f32 %v64_v60, %v60_v31  ;;  %v140_v27 = vadd.f32 %v136_v14, %v121_v17  ;;  %v233_v44 = vmul.f32 %v1725_v30, %v2133_v26 }
  0x14   :  { %1816 = vrcp.f32 %v81_v19  ;;  %v120_v35 = vmul.f32 %v1714_v33, %v2052_v22 }
  0x15   :  { %1818 = vrsqrt.f32 %v87_v25 }
  0x16   :  { %17 = vsyncpa [#allocation5], 0  ;;  %v72_v45 = vadd.f32 %v70_v16, %v66_v41  ;;  %v159_v46 = vadd.f32 %v155_v18, %v140_v27  ;;  %v207_v47 = vrot.slane %v68_v0, %v2031_v13  ;;  %v139_v48 = vmul.f32 %v1716_v39, %v2055_v23  ;;  %v1722_v52 = vld [vmem:[%s2683_s1 + $0x58] sm:$0xff]  ;;  %v1741_v16 = vld [vmem:[%s2682_s0 + $0x3] ss:$0 sm:$0xff]  ;;  %s1949_s22 = smov [#allocation2]  }
  0x17   :  { %v193_v49 = vmul.f32 %v2084_v36, %v2143_v38  ;;  %v2162_v50 = vrot.slane %v74_v5, %v2031_v13  ;;  %v124_v51 = vadd.f32 %v120_v35, %v105_v20  ;;  %v158_v22 = vmul.f32 %v1718_v43, %v2058_v24  ;;  %v1724_v36 = vld [vmem:[%s2683_s1 + $0x68] sm:$0xff]  ;;  %v1726_v58 = vld [vmem:[%s2683_s1 + $0x78] sm:$0xff]  ;;  %v2230_v18 = vld [vmem:[%s2683_s1 + $0x90] sm:$0xff]  ;;  %s1675_s23 = sshll.u32 %s1949_s22, 4  ;;  %s1676_s23 = int_to_ptr.vmem [resolvable:$true] %s1675_s23 }
  0x18   :  { %v218_v53 = vadd.f32 %v214_v55, %v199_v40  ;;  %v2168_v54 = vadd.f32 %v76_v32, %v72_v45  ;;  %v178_v56 = vadd.f32 %v174_v34, %v159_v46  ;;  %v177_v57 = vmul.f32 %v1720_v21, %v2064_v28  ;;  %v1729_v55 = vld [vmem:[%s2682_s0] ss:$0 sm:$0xff]  ;;  %v2187_v5 = vld [vmem:[%s2683_s1 + $0x88] sm:$0xff]  ;;  %v2195_v11 = vld [vmem:[%s2683_s1 + $0x98] sm:$0xff]  ;;  %s1880_s24 = scalar_lea.vmem %s1676_s23, 64  ;;  %p1885_p1 = scmp.lt.s32.totalorder %s1676_s23, %s1676_s23 }
  0x19   :  { %v143_v23 = vadd.f32 %v139_v48, %v124_v51  ;;  %v103_v24 = vmul.f32 %v97_v61, %v93_v15  ;;  %v118_v59 = vmul.f32 %v1714_v33, %v112_v1  ;;  %v137_v60 = vmul.f32 %v1716_v39, %v131_v2  ;;  %v1733_v61 = vld [vmem:[%s2682_s0 + $0x1] ss:$0 sm:$0xff]  ;;  %v2217_v31 = vld [vmem:[%s2683_s1 + $0xb8] sm:$0xff]  ;;  %v1745_v40 = vld [vmem:[%s2682_s0 + $0x4] ss:$0 sm:$0xff]  ;;  %p1881_p0 = scmp.ne.s32.totalorder %s1676_s23, %s1880_s24  ;;  %p1886_p2 = scmp.lt.s32.totalorder %s1880_s24, %s1880_s24 }
  0x1a   :  { %v80_v62 = vadd.f32 1.0, %v2168_v54  ;;  %v86_v28 = vadd.f32 1e-12, %v2168_v54  ;;  %v212_v63 = vmul.f32 %v2095_v42, %v207_v47  ;;  %v196_v0 = vmul.f32 %v1722_v52, %v2067_v29  ;;  %v1737_v29 = vld [vmem:[%s2682_s0 + $0x2] ss:$0 sm:$0xff]  ;;  %v2203_v42 = vld [vmem:[%s2683_s1 + $0xa8] sm:$0xff] }
  0x1b   :  { %v197_v1 = vadd.f32 %v193_v49, %v178_v56  ;;  %v162_v2 = vadd.f32 %v158_v22, %v143_v23  ;;  %v122_v6 = vadd.f32 %v118_v59, %v103_v24  ;;  %v156_v10 = vmul.f32 %v1718_v43, %v150_v7  ;;  %v2244_v41 = vld [vmem:[%s2683_s1 + $0xa0] sm:$0xff]  ;;  %v2259_v46 = vld [vmem:[%s2683_s1 + $0xb0] sm:$0xff]  ;;  %v1730_v59 = vld [vmem:[%s2682_s0 + $0x8] ss:$0 sm:$0xff]  ;;  %p1887_p3 = por %p1886_p2, %p1885_p1 }
  0x1c   :  { %1820 = vrcp.f32 %v80_v62  ;;  %v2206_v12 = vmul.f32 %v1725_v30, %v2162_v50  ;;  %v215_v7 = vmul.f32 %v1724_v36, %v2087_v37  ;;  %v175_v14 = vmul.f32 %v1720_v21, %v2125_v8  ;;  %v2222_v37 = vld [vmem:[%s2683_s1 + $0x80] sm:$0xff]  ;;  %v2253_v21 = vld [vmem:[%s2683_s1 + $0xd8] sm:$0xff] }
  0x1d   :  { %1822 = vrsqrt.f32 %v86_v28  ;;  %v181_v15 = vadd.f32 %v177_v57, %v162_v2  ;;  %v141_v19 = vadd.f32 %v137_v60, %v122_v6  ;;  %v686_v25 = vmul.f32 %v1729_v55, %v2187_v5  ;;  %v1753_v22 = vld [vmem:[%s2682_s0 + $0x6] ss:$0 sm:$0xff]  ;;  %v2288_v62 = vld [vmem:[%s2683_s1 + $0xf8] sm:$0xff]  ;;  %v1734_v28 = vld [vmem:[%s2682_s0 + $0x9] ss:$0 sm:$0xff]  ;;  %p1888_p4 = pnand %p1887_p3, %p1881_p0 }
  0x1e   :  { %v237_v8 = vadd.f32 %v233_v44, %v218_v53  ;;  %v234_v30 = vmul.f32 %v1726_v58, %v2133_v26  ;;  %v703_v32 = vmul.f32 %v1733_v61, %v2195_v11  ;;  %v724_v17 = vmul.f32 %v1737_v29, %v2203_v42  ;;  %v1744_v26 = vld [vmem:[%s2683_s1 + $0xc8] sm:$0xff]  ;;  %v2274_v56 = vld [vmem:[%s2683_s1 + $0xc0] sm:$0xff]  ;;  %v1747_v6 = vld [vmem:[%s2683_s1 + $0xd0] sm:$0xff] }
  0x1f   :  { %v2232_v33 = vadd.f32 %v212_v63, %v197_v1  ;;  %v200_v34 = vadd.f32 %v196_v0, %v181_v15  ;;  %v160_v20 = vadd.f32 %v156_v10, %v141_v19  ;;  %v194_v39 = vmul.f32 %v1722_v52, %v2143_v38  ;;  %v1749_v38 = vld [vmem:[%s2682_s0 + $0x5] ss:$0 sm:$0xff]  ;;  %v2268_v52 = vld [vmem:[%s2683_s1 + $0xe8] sm:$0xff] }
  0x20   :  { %v213_v43 = vmul.f32 %v1724_v36, %v207_v47  ;;  %v707_v44 = vadd.f32 %v703_v32, %v686_v25  ;;  %v745_v35 = vmul.f32 %v1741_v16, %v2217_v31  ;;  %v685_v45 = vmul.f32 %v1729_v55, %v2222_v37  ;;  %v1757_v36 = vld [vmem:[%s2682_s0 + $0x7] ss:$0 sm:$0xff]  ;;  %v1738_v63 = vld [vmem:[%s2682_s0 + $0xa] ss:$0 sm:$0xff]  ;;  %v1742_v19 = vld [vmem:[%s2682_s0 + $0xb] ss:$0 sm:$0xff] }
  0x21   :  { %v1817_v27 = vpop.eup %1816  ;;  %v219_v49 = vadd.f32 %v215_v7, %v200_v34  ;;  %v179_v51 = vadd.f32 %v175_v14, %v160_v20  ;;  %v702_v53 = vmul.f32 %v1733_v61, %v2230_v18  ;;  %v766_v23 = vmul.f32 %v1745_v40, %v1744_v26  ;;  %v2305_v10 = vld [vmem:[%s2683_s1 + $0xe0] sm:$0xff]  ;;  %v1746_v34 = vld [vmem:[%s2682_s0 + $0xc] ss:$0 sm:$0xff] }
  0x22   :  { %v1819_v47 = vpop.eup %1818  ;;  %v85_v48 = vmul.f32 %v1817_v27, %v2118_v4  ;;  %v232_v4 = vmul.f32 %v1726_v58, %v2162_v50  ;;  %v728_v57 = vadd.f32 %v724_v17, %v707_v44  ;;  %v723_v24 = vmul.f32 %v1737_v29, %v2244_v41 }
  0x23   :  { %v787_v55 = vmul.f32 %v1749_v38, %v2253_v21  ;;  %v706_v50 = vadd.f32 %v702_v53, %v685_v45  ;;  %v744_v58 = vmul.f32 %v1741_v16, %v2259_v46  ;;  %v198_v0 = vadd.f32 %v194_v39, %v179_v51 }
  0x24   :  { %v91_v60 = vmul.f32 %v1819_v47, %v85_v48  ;;  %v749_v61 = vadd.f32 %v745_v35, %v728_v57  ;;  %v808_v1 = vmul.f32 %v1753_v22, %v2268_v52  ;;  %v765_v2 = vmul.f32 %v1745_v40, %v2274_v56 }
  0x25   :  { %v238_v7 = vadd.f32 %v234_v30, %v219_v49  ;;  %v727_v14 = vadd.f32 %v723_v24, %v706_v50  ;;  %v688_v15 = vmul.f32 %v1730_v59, %v2187_v5  ;;  %v829_v16 = vmul.f32 %v1757_v36, %v2288_v62 }
  0x26   :  { %v2308_v29 = vrot.slane %v91_v60, %v2031_v13  ;;  %v770_v25 = vadd.f32 %v766_v23, %v749_v61  ;;  %v705_v32 = vmul.f32 %v1734_v28, %v2195_v11  ;;  %v726_v17 = vmul.f32 %v1738_v63, %v2203_v42  ;;  %v1750_v11 = vld [vmem:[%s2682_s0 + $0xd] ss:$0 sm:$0xff] }
  0x27   :  { %v748_v20 = vadd.f32 %v744_v58, %v727_v14  ;;  %v786_v5 = vmul.f32 %v1749_v38, %v1747_v6  ;;  %v807_v39 = vmul.f32 %v1753_v22, %v2305_v10  ;;  %v217_v40 = vadd.f32 %v213_v43, %v198_v0  ;;  %v1754_v22 = vld [vmem:[%s2682_s0 + $0xe] ss:$0 sm:$0xff] }
  0x28   :  { %v2321_v30 = vmul.f32 %v2308_v29, %v237_v8  ;;  %v791_v27 = vadd.f32 %v787_v55, %v770_v25  ;;  %v709_v44 = vadd.f32 %v705_v32, %v688_v15  ;;  %v747_v35 = vmul.f32 %v1742_v19, %v2217_v31  ;;  %v1755_v31 = vld [vmem:[%s2683_s1 + $0xf0] sm:$0xff] }
  0x29   :  { %v1821_v42 = vpop.eup %1820  ;;  %v2330_v45 = vmul.f32 %v2308_v29, %v238_v7  ;;  %v769_v8 = vadd.f32 %v765_v2, %v748_v20  ;;  %v768_v47 = vmul.f32 %v1746_v34, %v1744_v26  ;;  %v687_v38 = vmul.f32 %v1730_v59, %v2222_v37 }
  0x2a   :  { %255 = vadd.xlane.f32.xlu1 %v2321_v30  ;;  %v1823_v48 = vpop.eup %1822  ;;  %v83_v43 = vmul.f32 %v1821_v42, %v2168_v54  ;;  %v812_v49 = vadd.f32 %v808_v1, %v791_v27  ;;  %v730_v51 = vadd.f32 %v726_v17, %v709_v44  ;;  %v704_v53 = vmul.f32 %v1734_v28, %v2230_v18  ;;  %v1758_v18 = vld [vmem:[%s2682_s0 + $0xf] ss:$0 sm:$0xff] }
  0x2b   :  { %v235_v26 = vadd.f32 %v2206_v12, %v2232_v33  ;;  %v790_v57 = vadd.f32 %v786_v5, %v769_v8  ;;  %v789_v37 = vmul.f32 %v1750_v11, %v2253_v21  ;;  %v725_v54 = vmul.f32 %v1738_v63, %v2244_v41 }
  0x2c   :  { %v90_v23 = vmul.f32 %v1823_v48, %v83_v43  ;;  %v833_v24 = vadd.f32 %v829_v16, %v812_v49  ;;  %v751_v59 = vadd.f32 %v747_v35, %v730_v51  ;;  %v708_v60 = vadd.f32 %v704_v53, %v687_v38 }
  0x2d   :  { %v236_v55 = vadd.f32 %v232_v4, %v217_v40  ;;  %v828_v50 = vmul.f32 %v1757_v36, %v1755_v31  ;;  %v810_v58 = vmul.f32 %v1754_v22, %v2268_v52  ;;  %v746_v12 = vmul.f32 %v1742_v19, %v2259_v46 }
  0x2e   :  { %257 = vadd.xlane.f32.xlu1 %v2330_v45  ;;  %v242_v33 = vrot.slane %v90_v23, %v2031_v13  ;;  %v811_v21 = vadd.f32 %v807_v39, %v790_v57  ;;  %v772_v41 = vadd.f32 %v768_v47, %v751_v59  ;;  %v729_v28 = vadd.f32 %v725_v54, %v708_v60 }
  0x2f   :  { %v767_v63 = vmul.f32 %v1746_v34, %v2274_v56  ;;  %v831_v52 = vmul.f32 %v1758_v18, %v2288_v62  ;;  %v788_v1 = vmul.f32 %v1750_v11, %v1747_v6  ;;  %v809_v56 = vmul.f32 %v1754_v22, %v2305_v10 }
  0x30   :  { %v2353_v0 = vmul.f32 %v242_v33, %v235_v26  ;;  %v2355_v61 = vmul.f32 %v833_v24, %v242_v33  ;;  %v793_v4 = vadd.f32 %v789_v37, %v772_v41  ;;  %v750_v36 = vadd.f32 %v746_v12, %v729_v28 }
  0x31   :  { %v2359_v2 = vmul.f32 %v242_v33, %v236_v55  ;;  %v832_v46 = vadd.f32 %v828_v50, %v811_v21  ;;  %v830_v25 = vmul.f32 %v1758_v18, %v1755_v31  ;;  %v2376_v10 = vand.u32 127, %v94_v3 }
  0x32   :  { %251 = vadd.xlane.f32.xlu0 %v2353_v0  ;;  %842 = vadd.xlane.f32.xlu1 %v2355_v61  ;;  %v814_v7 = vadd.f32 %v810_v58, %v793_v4  ;;  %v771_v14 = vadd.f32 %v767_v63, %v750_v36  ;;  %vm282_vm0 = vcmask 130112   ;;  %vm293_vm1 = vcmask 1041409  }
  0x33   :  { %v2364_v16 = vmul.f32 %v832_v46, %v242_v33  ;;  %v277_v34 = vadd.s32 4294967288, %v2376_v10  ;;  %v2381_v5 = vsub.s32 %v2376_v10, %v2025_v9  ;;  %vm296_vm2 = vcmask 123904  }
  0x34   :  { %v835_v15 = vadd.f32 %v831_v52, %v814_v7  ;;  %v792_v19 = vadd.f32 %v788_v1, %v771_v14  ;;  %vm377_vm3 = vcmask 1041408   ;;  %vm669_vm4 = vcmask 122880  }
  0x35   :  { %v2384_v40 = vsub.s32 %v277_v34, %v2025_v9  ;;  %vm1261_vm5 = vcmask 7168   ;;  %vm1263_vm6 = vcmask 9216   ;;  %vm1948_vm9 = vmmov 0  }
  0x36   :  { %253 = vadd.xlane.f32.xlu0 %v2359_v2  ;;  %v2367_v62 = vmul.f32 %v835_v15, %v2308_v29  ;;  %v813_v6 = vadd.f32 %v809_v56, %v792_v19  ;;  %vm1303_vm11 = vcmask 130048   ;;  %vm1470_vm12 = vcmask 261120  }
  0x37   :  { %vm1573_vm13 = vcmask 523264  }
  0x38   :  { %846 = vadd.xlane.f32.xlu1 %v2367_v62  ;;  %v834_v32 = vadd.f32 %v830_v25, %v813_v6 }
  0x3a   :  { %840 = vadd.xlane.f32.xlu0 %v2364_v16  ;;  %v2372_v17 = vmul.f32 %v834_v32, %v2308_v29 }
  0x3e   :  { %844 = vadd.xlane.f32.xlu0 %v2372_v17 }
  0xb3   :  { %v256_v20 = vpop.xlane.xlu1 %255 }
  0xb4   :  { %v261_v39 = vmul.f32 0.0078125, %v256_v20 }
  0xb6   :  { %v319_v29 = vrot.slane %v261_v39, %v2381_v5  ;;  %v265_v38 = vmul.f32 %v261_v39, %v261_v39 }
  0xb7   :  { %v258_v27 = vpop.xlane.xlu1 %257 }
  0xb8   :  { %v262_v44 = vmul.f32 0.0078125, %v258_v27  ;;  %v287_v22 = vrot.slane %v265_v38, %v2381_v5 }
  0xba   :  { %v323_v35 = vrot.slane %v262_v44, %v2384_v40  ;;  %v266_v11 = vmul.f32 %v262_v44, %v262_v44 }
  0xbb   :  { %v252_v3 = vpop.xlane.xlu0 %251  ;;  %v843_v8 = vpop.xlane.xlu1 %842 }
  0xbc   :  { %v324_v42 = vsel %vm282_vm0, %v323_v35, %v319_v29  ;;  %v259_v47 = vmul.f32 0.0078125, %v252_v3  ;;  %v291_v48 = vrot.slane %v266_v11, %v2384_v40  ;;  %v849_v49 = vmul.f32 0.0078125, %v843_v8 }
  0xbe   :  { %v263_v31 = vmul.f32 %v259_v47, %v259_v47  ;;  %v310_v26 = vrot.slane %v259_v47, %v2381_v5  ;;  %v853_v23 = vmul.f32 %v849_v49, %v849_v49  ;;  %v897_v24 = vrot.slane %v849_v49, %v2384_v40 }
  0xbf   :  { %v254_v43 = vpop.xlane.xlu0 %253  ;;  %v292_v60 = vsel %vm282_vm0, %v291_v48, %v287_v22 }
  0xc0   :  { %v260_v51 = vmul.f32 0.0078125, %v254_v43  ;;  %v276_v55 = vrot.slane %v263_v31, %v2381_v5  ;;  %v867_v63 = vrot.slane %v853_v23, %v2384_v40  ;;  %v2418_v31 = vsub.s32 1, %v2025_v9 }
  0xc1   :  { %v847_v53 = vpop.xlane.xlu1 %846 }
  0xc2   :  { %v264_v57 = vmul.f32 %v260_v51, %v260_v51  ;;  %v314_v37 = vrot.slane %v260_v51, %v2384_v40  ;;  %v851_v54 = vmul.f32 0.0078125, %v847_v53 }
  0xc3   :  { %v841_v59 = vpop.xlane.xlu0 %840 }
  0xc4   :  { %v281_v50 = vrot.slane %v264_v57, %v2384_v40  ;;  %v315_v58 = vsel %vm282_vm0, %v314_v37, %v310_v26  ;;  %v848_v18 = vmul.f32 0.0078125, %v841_v59  ;;  %v855_v41 = vmul.f32 %v851_v54, %v851_v54 }
  0xc5   :  { %v325_v12 = vsel %vm293_vm1, %v324_v42, %v315_v58  ;;  %v906_v4 = vrot.slane %v851_v54, %v2384_v40 }
  0xc6   :  { %v852_v33 = vmul.f32 %v848_v18, %v848_v18  ;;  %v893_v21 = vrot.slane %v848_v18, %v2381_v5  ;;  %v283_v28 = vsel %vm282_vm0, %v281_v50, %v276_v55  ;;  %v876_v56 = vrot.slane %v855_v41, %v2384_v40 }
  0xc7   :  { %v845_v52 = vpop.xlane.xlu0 %844  ;;  %v294_v36 = vsel %vm293_vm1, %v292_v60, %v283_v28 }
  0xc8   :  { %v863_v1 = vrot.slane %v852_v33, %v2381_v5  ;;  %v898_v46 = vsel %vm282_vm0, %v897_v24, %v893_v21  ;;  %v850_v7 = vmul.f32 0.0078125, %v845_v52  ;;  %v297_v14 = vsel %vm296_vm2, %v294_v36, 0.0 }
  0xc9   :  { %298 = vadd.xlane.f32.xlu0 %v297_v14 }
  0xca   :  { %v854_v15 = vmul.f32 %v850_v7, %v850_v7  ;;  %v902_v19 = vrot.slane %v850_v7, %v2381_v5  ;;  %v868_v32 = vsel %vm282_vm0, %v867_v63, %v863_v1 }
  0xcc   :  { %v872_v25 = vrot.slane %v854_v15, %v2381_v5  ;;  %v907_v6 = vsel %vm282_vm0, %v906_v4, %v902_v19 }
  0xcd   :  { %v908_v34 = vsel %vm293_vm1, %v907_v6, %v898_v46 }
  0xce   :  { %v877_v20 = vsel %vm282_vm0, %v876_v56, %v872_v25 }
  0xcf   :  { %v878_v39 = vsel %vm293_vm1, %v877_v20, %v868_v32 }
  0xd0   :  { %v880_v27 = vsel %vm296_vm2, %v878_v39, 0.0 }
  0xd1   :  { %881 = vadd.xlane.f32.xlu1 %v880_v27 }
 0x152   :  { %v299_v44 = vpop.xlane.xlu0 %298 }
 0x153   :  { %v300_v29 = vadd.f32 1.0, %v299_v44  ;;  %v328_v35 = vadd.f32 1e-12, %v299_v44 }
 0x155   :  { %1824 = vrcp.f32 %v300_v29 }
 0x156   :  { %1826 = vrsqrt.f32 %v328_v35 }
 0x15a   :  { %v882_v3 = vpop.xlane.xlu1 %881 }
 0x15b   :  { %v883_v11 = vadd.f32 1.0, %v882_v3  ;;  %v911_v42 = vadd.f32 1e-12, %v882_v3 }
 0x15d   :  { %1828 = vrcp.f32 %v883_v11 }
 0x15e   :  { %1830 = vrsqrt.f32 %v911_v42 }
 0x162   :  { %v1825_v8 = vpop.eup %1824 }
 0x163   :  { %v302_v47 = vmul.f32 %v1825_v8, %v299_v44  ;;  %v1827_v48 = vpop.eup %1826 }
 0x165   :  { %v327_v38 = vmul.f32 %v325_v12, %v302_v47 }
 0x167   :  { %v330_v43 = vmul.f32 %v1827_v48, %v327_v38 }
 0x169   :  { %v334_v49 = vrot.slane %v330_v43, %v2031_v13  ;;  %v345_v53 = vrot.slane %v330_v43, %v2418_v31 }
 0x16a   :  { %v1829_v51 = vpop.eup %1828 }
 0x16b   :  { %v885_v22 = vmul.f32 %v1829_v51, %v882_v3  ;;  %340 = vbcast.lane.b32.xlu1 %v334_v49, 264  ;;  %336 = vbcast.lane.b32.xlu0 %v334_v49, 256  ;;  %v1831_v57 = vpop.eup %1830 }
 0x16d   :  { %v910_v26 = vmul.f32 %v908_v34, %v885_v22 }
 0x16f   :  { %347 = vbcast.lane.b32.xlu1 %v345_v53, 256  ;;  %v913_v37 = vmul.f32 %v1831_v57, %v910_v26 }
 0x171   :  { %v917_v54 = vrot.slane %v913_v37, %v2031_v13  ;;  %v928_v23 = vrot.slane %v913_v37, %v2418_v31 }
 0x173   :  { %351 = vbcast.lane.b32.xlu1 %v345_v53, 264  ;;  %919 = vbcast.lane.b32.xlu0 %v917_v54, 256 }
 0x177   :  { %923 = vbcast.lane.b32.xlu1 %v917_v54, 264  ;;  %930 = vbcast.lane.b32.xlu0 %v928_v23, 256 }
 0x17b   :  { %934 = vbcast.lane.b32.xlu1 %v928_v23, 264 }
 0x1dd   :  { %v341_v24 = vpop.permute.xlu1 %340  ;;  %v337_v59 = vpop.permute.xlu0 %336 }
 0x1de   :  { %v354_v60 = vmul.f32 %v341_v24, %v2359_v2  ;;  %v353_v55 = vmul.f32 %v337_v59, %v2353_v0 }
 0x1e0   :  { %v357_v50 = vadd.f32 %v354_v60, %v353_v55 }
 0x1e1   :  { %v348_v58 = vpop.permute.xlu1 %347 }
 0x1e2   :  { %v358_v18 = vrot.slane %v357_v50, 4  ;;  %v355_v41 = vmul.f32 %v348_v58, %v2321_v30 }
 0x1e4   :  { %v359_v12 = vadd.f32 %v358_v18, %v357_v50 }
 0x1e5   :  { %v352_v33 = vpop.permute.xlu1 %351  ;;  %v920_v21 = vpop.permute.xlu0 %919 }
 0x1e6   :  { %v356_v28 = vmul.f32 %v352_v33, %v2330_v45  ;;  %v360_v63 = vrot.slane %v359_v12, 2  ;;  %v936_v1 = vmul.f32 %v920_v21, %v2364_v16 }
 0x1e8   :  { %v364_v4 = vadd.f32 %v356_v28, %v355_v41  ;;  %v361_v14 = vadd.f32 %v360_v63, %v359_v12 }
 0x1e9   :  { %v924_v52 = vpop.permute.xlu1 %923  ;;  %v931_v7 = vpop.permute.xlu0 %930 }
 0x1ea   :  { %v365_v36 = vrot.slane %v364_v4, 4  ;;  %v937_v46 = vmul.f32 %v924_v52, %v2355_v61  ;;  %v938_v32 = vmul.f32 %v931_v7, %v2372_v17  ;;  %v362_v44 = vrot.slane %v361_v14, 1 }
 0x1ec   :  { %v366_v56 = vadd.f32 %v365_v36, %v364_v4  ;;  %v940_v15 = vadd.f32 %v937_v46, %v936_v1  ;;  %v2431_v8 = vadd.f32 %v362_v44, %v361_v14 }
 0x1ed   :  { %v935_v19 = vpop.permute.xlu1 %934 }
 0x1ee   :  { %v367_v25 = vrot.slane %v366_v56, 2  ;;  %v941_v6 = vrot.slane %v940_v15, 4  ;;  %v939_v34 = vmul.f32 %v935_v19, %v2367_v62 }
 0x1f0   :  { %v368_v20 = vadd.f32 %v367_v25, %v366_v56  ;;  %v942_v39 = vadd.f32 %v941_v6, %v940_v15  ;;  %v947_v27 = vadd.f32 %v939_v34, %v938_v32 }
 0x1f2   :  { %v943_v29 = vrot.slane %v942_v39, 2  ;;  %v948_v35 = vrot.slane %v947_v27, 4  ;;  %v369_v3 = vrot.slane %v368_v20, 1 }
 0x1f4   :  { %v944_v11 = vadd.f32 %v943_v29, %v942_v39  ;;  %v949_v42 = vadd.f32 %v948_v35, %v947_v27  ;;  %v2433_v47 = vadd.f32 %v369_v3, %v368_v20 }
 0x1f6   :  { %v950_v38 = vrot.slane %v949_v42, 2  ;;  %v375_v48 = vsel %vm293_vm1, %v2433_v47, %v2431_v8  ;;  %v945_v51 = vrot.slane %v944_v11, 1 }
 0x1f7   :  { %v378_v43 = vsel %vm377_vm3, %v375_v48, -inf }
 0x1f8   :  { %v951_v49 = vadd.f32 %v950_v38, %v949_v42  ;;  %379 = vmax.xlane.f32.xlu0 %v378_v43  ;;  %v2439_v53 = vadd.f32 %v945_v51, %v944_v11 }
 0x1fa   :  { %v952_v22 = vrot.slane %v951_v49, 1 }
 0x1fc   :  { %v2441_v26 = vadd.f32 %v952_v22, %v951_v49 }
 0x1fe   :  { %v958_v57 = vsel %vm293_vm1, %v2441_v26, %v2439_v53 }
 0x1ff   :  { %v960_v37 = vsel %vm377_vm3, %v958_v57, -inf }
 0x200   :  { %961 = vmax.xlane.f32.xlu1 %v960_v37 }
 0x281   :  { %v380_v54 = vpop.xlane.xlu0 %379 }
 0x282   :  { %v382_v23 = vrot.slane %v380_v54, 1  ;;  %v385_v24 = vsub.f32 %v2431_v8, %v380_v54 }
 0x284   :  { %v386_v59 = vsub.f32 %v2433_v47, %v382_v23  ;;  %v387_v60 = vmul.f32 1.442695, %v385_v24 }
 0x286   :  { %v389_v55 = vmul.f32 1.442695, %v386_v59 }
 0x288   :  { %1832 = vpow2.f32 %v389_v55 }
 0x289   :  { %v962_v50 = vpop.xlane.xlu1 %961  ;;  %1834 = vpow2.f32 %v387_v60 }
 0x28a   :  { %v964_v58 = vrot.slane %v962_v50, 1  ;;  %v967_v18 = vsub.f32 %v2439_v53, %v962_v50 }
 0x28c   :  { %v968_v12 = vsub.f32 %v2441_v26, %v964_v58  ;;  %v969_v33 = vmul.f32 1.442695, %v967_v18 }
 0x28e   :  { %v971_v21 = vmul.f32 1.442695, %v968_v12 }
 0x290   :  { %1836 = vpow2.f32 %v971_v21 }
 0x291   :  { %1838 = vpow2.f32 %v969_v33 }
 0x295   :  { %v1833_v41 = vpop.eup %1832 }
 0x296   :  { %v393_v28 = vrot.slane %v1833_v41, 7  ;;  %v1835_v63 = vpop.eup %1834 }
 0x298   :  { %v394_v4 = vsel %vm293_vm1, %v393_v28, %v1835_v63 }
 0x299   :  { %v396_v52 = vsel %vm377_vm3, %v394_v4, 0.0 }
 0x29a   :  { %397 = vadd.xlane.f32.xlu0 %v396_v52 }
 0x29d   :  { %v1837_v36 = vpop.eup %1836 }
 0x29e   :  { %v975_v1 = vrot.slane %v1837_v36, 7  ;;  %v1839_v46 = vpop.eup %1838 }
 0x2a0   :  { %v976_v7 = vsel %vm293_vm1, %v975_v1, %v1839_v46 }
 0x2a1   :  { %v978_v14 = vsel %vm377_vm3, %v976_v7, 0.0 }
 0x2a2   :  { %979 = vadd.xlane.f32.xlu0 %v978_v14 }
 0x323   :  { %v398_v56 = vpop.xlane.xlu0 %397 }
 0x324   :  { %1840 = vrcp.f32 %v398_v56 }
 0x32b   :  { %v980_v15 = vpop.xlane.xlu0 %979 }
 0x32c   :  { %1842 = vrcp.f32 %v980_v15 }
 0x331   :  { %v1841_v19 = vpop.eup %1840 }
 0x332   :  { %v404_v25 = vmul.f32 %v1841_v19, %v1835_v63  ;;  %v401_v20 = vrot.slane %v1841_v19, 1 }
 0x334   :  { %v409_v6 = vrot.slane %v404_v25, %v2031_v13  ;;  %v405_v44 = vmul.f32 %v1833_v41, %v401_v20 }
 0x336   :  { %v415_v32 = vmul.f32 %v409_v6, %v2359_v2  ;;  %v414_v34 = vmul.f32 %v409_v6, %v2353_v0  ;;  %v413_v42 = vrot.slane %v405_v44, %v2031_v13 }
 0x338   :  { %420 = vadd.xlane.f32.xlu1 %v415_v32  ;;  %418 = vadd.xlane.f32.xlu0 %v414_v34  ;;  %v417_v48 = vmul.f32 %v413_v42, %v2330_v45  ;;  %v416_v43 = vmul.f32 %v413_v42, %v2321_v30 }
 0x339   :  { %v1843_v39 = vpop.eup %1842 }
 0x33a   :  { %v986_v27 = vmul.f32 %v1843_v39, %v1839_v46  ;;  %v983_v29 = vrot.slane %v1843_v39, 1 }
 0x33c   :  { %v991_v35 = vrot.slane %v986_v27, %v2031_v13  ;;  %v987_v38 = vmul.f32 %v1837_v36, %v983_v29 }
 0x33e   :  { %v997_v3 = vmul.f32 %v991_v35, %v2355_v61  ;;  %v996_v11 = vmul.f32 %v991_v35, %v2364_v16  ;;  %v995_v49 = vrot.slane %v987_v38, %v2031_v13 }
 0x340   :  { %1002 = vadd.xlane.f32.xlu1 %v997_v3  ;;  %1000 = vadd.xlane.f32.xlu0 %v996_v11  ;;  %v999_v51 = vmul.f32 %v995_v49, %v2367_v62  ;;  %v998_v22 = vmul.f32 %v995_v49, %v2372_v17 }
 0x344   :  { %424 = vadd.xlane.f32.xlu1 %v417_v48  ;;  %422 = vadd.xlane.f32.xlu0 %v416_v43 }
 0x348   :  { %1006 = vadd.xlane.f32.xlu1 %v999_v51  ;;  %1004 = vadd.xlane.f32.xlu0 %v998_v22 }
 0x3c1   :  { %v421_v57 = vpop.xlane.xlu1 %420  ;;  %v419_v37 = vpop.xlane.xlu0 %418 }
 0x3c2   :  { %v471_v54 = vrot.slane %v421_v57, %v2384_v40  ;;  %v467_v23 = vrot.slane %v419_v37, %v2381_v5  ;;  %v427_v58 = vmul.f32 %v421_v57, %v421_v57  ;;  %v426_v18 = vmul.f32 %v419_v37, %v419_v37 }
 0x3c4   :  { %v472_v24 = vsel %vm282_vm0, %v471_v54, %v467_v23  ;;  %v441_v1 = vrot.slane %v427_v58, %v2384_v40  ;;  %v437_v46 = vrot.slane %v426_v18, %v2381_v5 }
 0x3c6   :  { %v442_v39 = vsel %vm282_vm0, %v441_v1, %v437_v46 }
 0x3c9   :  { %v1003_v59 = vpop.xlane.xlu1 %1002  ;;  %v1001_v60 = vpop.xlane.xlu0 %1000 }
 0x3ca   :  { %v1053_v55 = vrot.slane %v1003_v59, %v2384_v40  ;;  %v1049_v50 = vrot.slane %v1001_v60, %v2381_v5  ;;  %v1009_v33 = vmul.f32 %v1003_v59, %v1003_v59  ;;  %v1008_v21 = vmul.f32 %v1001_v60, %v1001_v60 }
 0x3cc   :  { %v1054_v12 = vsel %vm282_vm0, %v1053_v55, %v1049_v50  ;;  %v1023_v6 = vrot.slane %v1009_v33, %v2384_v40  ;;  %v1019_v32 = vrot.slane %v1008_v21, %v2381_v5 }
 0x3cd   :  { %v425_v41 = vpop.xlane.xlu1 %424  ;;  %v423_v28 = vpop.xlane.xlu0 %422 }
 0x3ce   :  { %v429_v63 = vmul.f32 %v425_v41, %v425_v41  ;;  %v480_v4 = vrot.slane %v425_v41, %v2384_v40  ;;  %v428_v52 = vmul.f32 %v423_v28, %v423_v28  ;;  %v476_v36 = vrot.slane %v423_v28, %v2381_v5 }
 0x3cf   :  { %v1024_v11 = vsel %vm282_vm0, %v1023_v6, %v1019_v32 }
 0x3d0   :  { %v450_v7 = vrot.slane %v429_v63, %v2384_v40  ;;  %v446_v14 = vrot.slane %v428_v52, %v2381_v5  ;;  %v481_v56 = vsel %vm282_vm0, %v480_v4, %v476_v36 }
 0x3d1   :  { %v1007_v15 = vpop.xlane.xlu1 %1006  ;;  %v1005_v19 = vpop.xlane.xlu0 %1004  ;;  %v482_v25 = vsel %vm293_vm1, %v481_v56, %v472_v24 }
 0x3d2   :  { %v1011_v34 = vmul.f32 %v1007_v15, %v1007_v15  ;;  %v1010_v20 = vmul.f32 %v1005_v19, %v1005_v19  ;;  %v451_v27 = vsel %vm282_vm0, %v450_v7, %v446_v14  ;;  %v1062_v54 = vrot.slane %v1007_v15, %v2384_v40 }
 0x3d3   :  { %v452_v35 = vsel %vm293_vm1, %v451_v27, %v442_v39  ;;  %v1058_v23 = vrot.slane %v1005_v19, %v2381_v5 }
 0x3d4   :  { %v1032_v44 = vrot.slane %v1011_v34, %v2384_v40  ;;  %v1028_v29 = vrot.slane %v1010_v20, %v2381_v5  ;;  %v454_v3 = vsel %vm296_vm2, %v452_v35, 0.0 }
 0x3d5   :  { %455 = vadd.xlane.f32.xlu0 %v454_v3  ;;  %v1063_v60 = vsel %vm282_vm0, %v1062_v54, %v1058_v23 }
 0x3d6   :  { %v1033_v42 = vsel %vm282_vm0, %v1032_v44, %v1028_v29  ;;  %v1064_v21 = vsel %vm293_vm1, %v1063_v60, %v1054_v12 }
 0x3d7   :  { %v1034_v38 = vsel %vm293_vm1, %v1033_v42, %v1024_v11 }
 0x3d8   :  { %v1036_v48 = vsel %vm296_vm2, %v1034_v38, 0.0 }
 0x3d9   :  { %1037 = vadd.xlane.f32.xlu1 %v1036_v48 }
 0x45e   :  { %v456_v43 = vpop.xlane.xlu0 %455 }
 0x45f   :  { %v457_v49 = vadd.f32 1.0, %v456_v43  ;;  %v485_v51 = vadd.f32 1e-12, %v456_v43 }
 0x461   :  { %1844 = vrcp.f32 %v457_v49 }
 0x462   :  { %v1038_v22 = vpop.xlane.xlu1 %1037 }
 0x463   :  { %v1039_v57 = vadd.f32 1.0, %v1038_v22  ;;  %v1067_v37 = vadd.f32 1e-12, %v1038_v22 }
 0x465   :  { %1846 = vrcp.f32 %v1039_v57 }
 0x466   :  { %1848 = vrsqrt.f32 %v485_v51 }
 0x467   :  { %1850 = vrsqrt.f32 %v1067_v37 }
 0x46e   :  { %v1845_v24 = vpop.eup %1844 }
 0x46f   :  { %v459_v59 = vmul.f32 %v1845_v24, %v456_v43 }
 0x471   :  { %v484_v50 = vmul.f32 %v482_v25, %v459_v59 }
 0x472   :  { %v1847_v55 = vpop.eup %1846 }
 0x473   :  { %v1849_v58 = vpop.eup %1848  ;;  %v1041_v18 = vmul.f32 %v1847_v55, %v1038_v22 }
 0x474   :  { %v487_v33 = vmul.f32 %v1849_v58, %v484_v50  ;;  %v1851_v28 = vpop.eup %1850 }
 0x475   :  { %v1066_v41 = vmul.f32 %v1064_v21, %v1041_v18 }
 0x476   :  { %v491_v63 = vrot.slane %v487_v33, %v2031_v13  ;;  %v502_v36 = vrot.slane %v487_v33, %v2418_v31 }
 0x477   :  { %v1069_v4 = vmul.f32 %v1851_v28, %v1066_v41 }
 0x478   :  { %497 = vbcast.lane.b32.xlu1 %v491_v63, 264  ;;  %493 = vbcast.lane.b32.xlu0 %v491_v63, 256 }
 0x479   :  { %v1073_v52 = vrot.slane %v1069_v4, %v2031_v13  ;;  %v1084_v1 = vrot.slane %v1069_v4, %v2418_v31 }
 0x47c   :  { %504 = vbcast.lane.b32.xlu1 %v502_v36, 256  ;;  %1075 = vbcast.lane.b32.xlu0 %v1073_v52, 256 }
 0x480   :  { %508 = vbcast.lane.b32.xlu1 %v502_v36, 264  ;;  %1086 = vbcast.lane.b32.xlu0 %v1084_v1, 256 }
 0x484   :  { %1079 = vbcast.lane.b32.xlu1 %v1073_v52, 264 }
 0x488   :  { %1090 = vbcast.lane.b32.xlu1 %v1084_v1, 264 }
 0x4ea   :  { %v498_v12 = vpop.permute.xlu1 %497  ;;  %v494_v46 = vpop.permute.xlu0 %493 }
 0x4eb   :  { %v511_v7 = vmul.f32 %v498_v12, %v2359_v2  ;;  %v510_v14 = vmul.f32 %v494_v46, %v2353_v0 }
 0x4ed   :  { %v514_v56 = vadd.f32 %v511_v7, %v510_v14 }
 0x4ee   :  { %v505_v15 = vpop.permute.xlu1 %504  ;;  %v1076_v6 = vpop.permute.xlu0 %1075 }
 0x4ef   :  { %v515_v19 = vrot.slane %v514_v56, 4  ;;  %v512_v20 = vmul.f32 %v505_v15, %v2321_v30  ;;  %v1092_v35 = vmul.f32 %v1076_v6, %v2364_v16 }
 0x4f1   :  { %v516_v25 = vadd.f32 %v515_v19, %v514_v56 }
 0x4f2   :  { %v509_v32 = vpop.permute.xlu1 %508  ;;  %v1087_v11 = vpop.permute.xlu0 %1086 }
 0x4f3   :  { %v517_v34 = vrot.slane %v516_v25, 2  ;;  %v513_v39 = vmul.f32 %v509_v32, %v2330_v45  ;;  %v1094_v43 = vmul.f32 %v1087_v11, %v2372_v17 }
 0x4f5   :  { %v521_v27 = vadd.f32 %v513_v39, %v512_v20  ;;  %v518_v29 = vadd.f32 %v517_v34, %v516_v25 }
 0x4f6   :  { %v1080_v44 = vpop.permute.xlu1 %1079 }
 0x4f7   :  { %v522_v3 = vrot.slane %v521_v27, 4  ;;  %v1093_v42 = vmul.f32 %v1080_v44, %v2355_v61  ;;  %v519_v51 = vrot.slane %v518_v29, 1 }
 0x4f9   :  { %v523_v38 = vadd.f32 %v522_v3, %v521_v27  ;;  %v1096_v48 = vadd.f32 %v1093_v42, %v1092_v35  ;;  %v520_v50 = vadd.f32 %v519_v51, %v518_v29 }
 0x4fa   :  { %v1091_v49 = vpop.permute.xlu1 %1090 }
 0x4fb   :  { %v524_v22 = vrot.slane %v523_v38, 2  ;;  %v1097_v57 = vrot.slane %v1096_v48, 4  ;;  %v1095_v37 = vmul.f32 %v1091_v49, %v2367_v62  ;;  %v528_v28 = vadd.f32 %v520_v50, %v2431_v8 }
 0x4fd   :  { %v525_v54 = vadd.f32 %v524_v22, %v523_v38  ;;  %v1098_v23 = vadd.f32 %v1097_v57, %v1096_v48  ;;  %v1103_v24 = vadd.f32 %v1095_v37, %v1094_v43 }
 0x4ff   :  { %v526_v59 = vrot.slane %v525_v54, 1  ;;  %v1099_v60 = vrot.slane %v1098_v23, 2  ;;  %v1104_v55 = vrot.slane %v1103_v24, 4 }
 0x501   :  { %v1100_v58 = vadd.f32 %v1099_v60, %v1098_v23  ;;  %v1105_v18 = vadd.f32 %v1104_v55, %v1103_v24  ;;  %v527_v33 = vadd.f32 %v526_v59, %v525_v54 }
 0x503   :  { %v1101_v21 = vrot.slane %v1100_v58, 1  ;;  %v1106_v41 = vrot.slane %v1105_v18, 2  ;;  %v529_v63 = vadd.f32 %v527_v33, %v2433_v47 }
 0x505   :  { %v1107_v4 = vadd.f32 %v1106_v41, %v1105_v18  ;;  %v532_v52 = vsel %vm293_vm1, %v529_v63, %v528_v28  ;;  %v1102_v12 = vadd.f32 %v1101_v21, %v1100_v58 }
 0x506   :  { %v534_v36 = vsel %vm377_vm3, %v532_v52, -inf }
 0x507   :  { %v1108_v1 = vrot.slane %v1107_v4, 1  ;;  %535 = vmax.xlane.f32.xlu0 %v534_v36  ;;  %v1110_v7 = vadd.f32 %v1102_v12, %v2439_v53 }
 0x509   :  { %v1109_v46 = vadd.f32 %v1108_v1, %v1107_v4 }
 0x50b   :  { %v1111_v14 = vadd.f32 %v1109_v46, %v2441_v26 }
 0x50d   :  { %v1114_v56 = vsel %vm293_vm1, %v1111_v14, %v1110_v7 }
 0x50e   :  { %v1116_v15 = vsel %vm377_vm3, %v1114_v56, -inf }
 0x50f   :  { %1117 = vmax.xlane.f32.xlu1 %v1116_v15 }
 0x590   :  { %v536_v8 = vpop.xlane.xlu0 %535 }
 0x591   :  { %v538_v47 = vrot.slane %v536_v8, 1  ;;  %v541_v19 = vsub.f32 %v528_v28, %v536_v8 }
 0x593   :  { %v542_v25 = vsub.f32 %v529_v63, %v538_v47  ;;  %v543_v6 = vmul.f32 1.442695, %v541_v19 }
 0x595   :  { %v545_v32 = vmul.f32 1.442695, %v542_v25 }
 0x597   :  { %1852 = vpow2.f32 %v545_v32 }
 0x598   :  { %v1118_v34 = vpop.xlane.xlu1 %1117  ;;  %1854 = vpow2.f32 %v543_v6 }
 0x599   :  { %v1120_v20 = vrot.slane %v1118_v34, 1  ;;  %v1123_v39 = vsub.f32 %v1110_v7, %v1118_v34 }
 0x59b   :  { %v1124_v27 = vsub.f32 %v1111_v14, %v1120_v20  ;;  %v1125_v53 = vmul.f32 1.442695, %v1123_v39 }
 0x59d   :  { %v1127_v44 = vmul.f32 1.442695, %v1124_v27 }
 0x59f   :  { %1856 = vpow2.f32 %v1127_v44 }
 0x5a0   :  { %1858 = vpow2.f32 %v1125_v53 }
 0x5a4   :  { %v1853_v26 = vpop.eup %1852 }
 0x5a5   :  { %v549_v29 = vrot.slane %v1853_v26, 7  ;;  %v1855_v35 = vpop.eup %1854 }
 0x5a7   :  { %v550_v3 = vsel %vm293_vm1, %v549_v29, %v1855_v35 }
 0x5a8   :  { %v552_v11 = vsel %vm377_vm3, %v550_v3, 0.0 }
 0x5a9   :  { %553 = vadd.xlane.f32.xlu0 %v552_v11 }
 0x5ac   :  { %v1857_v42 = vpop.eup %1856 }
 0x5ad   :  { %v1131_v38 = vrot.slane %v1857_v42, 7  ;;  %v1859_v48 = vpop.eup %1858 }
 0x5af   :  { %v1132_v43 = vsel %vm293_vm1, %v1131_v38, %v1859_v48 }
 0x5b0   :  { %v1134_v49 = vsel %vm377_vm3, %v1132_v43, 0.0 }
 0x5b1   :  { %1135 = vadd.xlane.f32.xlu0 %v1134_v49 }
 0x632   :  { %v554_v51 = vpop.xlane.xlu0 %553 }
 0x633   :  { %1860 = vrcp.f32 %v554_v51 }
 0x63a   :  { %v1136_v22 = vpop.xlane.xlu0 %1135 }
 0x63b   :  { %1862 = vrcp.f32 %v1136_v22 }
 0x640   :  { %v1861_v57 = vpop.eup %1860 }
 0x641   :  { %v560_v37 = vmul.f32 %v1861_v57, %v1855_v35  ;;  %v557_v59 = vrot.slane %v1861_v57, 1 }
 0x643   :  { %v565_v54 = vrot.slane %v560_v37, %v2031_v13  ;;  %v561_v50 = vmul.f32 %v1853_v26, %v557_v59 }
 0x645   :  { %v571_v23 = vmul.f32 %v565_v54, %v2359_v2  ;;  %v570_v24 = vmul.f32 %v565_v54, %v2353_v0  ;;  %v569_v41 = vrot.slane %v561_v50, %v2031_v13 }
 0x647   :  { %576 = vadd.xlane.f32.xlu1 %v571_v23  ;;  %574 = vadd.xlane.f32.xlu0 %v570_v24  ;;  %v573_v0 = vmul.f32 %v569_v41, %v2330_v45  ;;  %v572_v2 = vmul.f32 %v569_v41, %v2321_v30 }
 0x648   :  { %v1863_v60 = vpop.eup %1862 }
 0x649   :  { %v1142_v55 = vmul.f32 %v1863_v60, %v1859_v48  ;;  %v1139_v58 = vrot.slane %v1863_v60, 1 }
 0x64b   :  { %v1147_v18 = vrot.slane %v1142_v55, %v2031_v13  ;;  %v1143_v28 = vmul.f32 %v1857_v42, %v1139_v58 }
 0x64d   :  { %v1153_v33 = vmul.f32 %v1147_v18, %v2355_v61  ;;  %v1152_v21 = vmul.f32 %v1147_v18, %v2364_v16  ;;  %v1151_v63 = vrot.slane %v1143_v28, %v2031_v13  ;;  %v1944_v18 = vmov 1966171168  }
 0x64f   :  { %1158 = vadd.xlane.f32.xlu1 %v1153_v33  ;;  %1156 = vadd.xlane.f32.xlu0 %v1152_v21  ;;  %v1155_v4 = vmul.f32 %v1151_v63, %v2367_v62  ;;  %v1154_v52 = vmul.f32 %v1151_v63, %v2372_v17  ;;  %v646_v33 = vunpack.c.l.s4 %v1944_v18  ;;  %v1460_v18 = vld [vmem:[%s2686_s4 + $0x8] sm:$0xff] }
 0x651   :  { %v647_v28 = vunpack.c.0.s8 %v646_v33  ;;  %v1459_v33 = vld [vmem:[%s2686_s4] sm:$0xff] }
 0x653   :  { %580 = vadd.xlane.f32.xlu1 %v573_v0  ;;  %578 = vadd.xlane.f32.xlu0 %v572_v2 }
 0x657   :  { %1162 = vadd.xlane.f32.xlu1 %v1155_v4  ;;  %1160 = vadd.xlane.f32.xlu0 %v1154_v52 }
 0x6d0   :  { %v577_v61 = vpop.xlane.xlu1 %576  ;;  %v575_v16 = vpop.xlane.xlu0 %574 }
 0x6d1   :  { %v627_v36 = vrot.slane %v577_v61, %v2384_v40  ;;  %v623_v1 = vrot.slane %v575_v16, %v2381_v5  ;;  %v583_v14 = vmul.f32 %v577_v61, %v577_v61  ;;  %v582_v62 = vmul.f32 %v575_v16, %v575_v16 }
 0x6d2   :  { %v650_v61 = vsub.s32 %v647_v28, %v2025_v9  ;;  %v1558_v28 = vld [vmem:[%s2688_s6 + $0x68] sm:$0xff] }
 0x6d3   :  { %v628_v45 = vsel %vm282_vm0, %v627_v36, %v623_v1  ;;  %v597_v34 = vrot.slane %v583_v14, %v2384_v40  ;;  %v593_v20 = vrot.slane %v582_v62, %v2381_v5 }
 0x6d5   :  { %v598_v38 = vsel %vm282_vm0, %v597_v34, %v593_v20 }
 0x6d8   :  { %v1159_v12 = vpop.xlane.xlu1 %1158  ;;  %v1157_v30 = vpop.xlane.xlu0 %1156 }
 0x6d9   :  { %v1209_v46 = vrot.slane %v1159_v12, %v2384_v40  ;;  %v1205_v7 = vrot.slane %v1157_v30, %v2381_v5  ;;  %v1165_v56 = vmul.f32 %v1159_v12, %v1159_v12  ;;  %v1164_v15 = vmul.f32 %v1157_v30, %v1157_v30 }
 0x6db   :  { %v1210_v17 = vsel %vm282_vm0, %v1209_v46, %v1205_v7  ;;  %v1179_v35 = vrot.slane %v1165_v56, %v2384_v40  ;;  %v1175_v3 = vrot.slane %v1164_v15, %v2381_v5 }
 0x6dc   :  { %v581_v8 = vpop.xlane.xlu1 %580  ;;  %v579_v47 = vpop.xlane.xlu0 %578 }
 0x6dd   :  { %v585_v19 = vmul.f32 %v581_v8, %v581_v8  ;;  %v636_v25 = vrot.slane %v581_v8, %v2384_v40  ;;  %v584_v6 = vmul.f32 %v579_v47, %v579_v47  ;;  %v632_v32 = vrot.slane %v579_v47, %v2381_v5 }
 0x6de   :  { %v1180_v57 = vsel %vm282_vm0, %v1179_v35, %v1175_v3 }
 0x6df   :  { %v606_v39 = vrot.slane %v585_v19, %v2384_v40  ;;  %v602_v27 = vrot.slane %v584_v6, %v2381_v5  ;;  %v637_v53 = vsel %vm282_vm0, %v636_v25, %v632_v32 }
 0x6e0   :  { %v1163_v44 = vpop.xlane.xlu1 %1162  ;;  %v1161_v26 = vpop.xlane.xlu0 %1160  ;;  %v638_v29 = vsel %vm293_vm1, %v637_v53, %v628_v45 }
 0x6e1   :  { %v1167_v11 = vmul.f32 %v1163_v44, %v1163_v44  ;;  %v1166_v42 = vmul.f32 %v1161_v26, %v1161_v26  ;;  %v607_v48 = vsel %vm282_vm0, %v606_v39, %v602_v27  ;;  %v1218_v21 = vrot.slane %v1163_v44, %v2384_v40 }
 0x6e2   :  { %v608_v51 = vsel %vm293_vm1, %v607_v48, %v598_v38  ;;  %v1214_v41 = vrot.slane %v1161_v26, %v2381_v5  ;;  %v1947_v38 = vmov 0.0   ;;  %v1302_v48 = vld [vmem:[%s2684_s2 + $0x18] sm:$0xff] }
 0x6e3   :  { %v1188_v43 = vrot.slane %v1167_v11, %v2384_v40  ;;  %v1184_v49 = vrot.slane %v1166_v42, %v2381_v5  ;;  %v610_v22 = vsel %vm296_vm2, %v608_v51, 0.0  ;;  %v1945_v11 = vmov 1   ;;  %1778 = vmatprep.subr.mxu0 %v1947_v38  ;;  %1641 = vmatprep.mubr.f32.mxu1 %v1947_v38 }
 0x6e4   :  { %611 = vadd.xlane.f32.xlu0 %v610_v22  ;;  %v1219_v63 = vsel %vm282_vm0, %v1218_v21, %v1214_v41  ;;  %1813 = vset.pattern.permute.xlu1 %v1945_v11  ;;  %v1946_v42 = vmov 0   ;;  %v1560_v21 = vld [vmem:[%s2688_s6 + $0x78] sm:$0xff]  ;;  %v1559_v41 = vld [vmem:[%s2688_s6 + $0x70] sm:$0xff] }
 0x6e5   :  { %v1189_v37 = vsel %vm282_vm0, %v1188_v43, %v1184_v49  ;;  %v1220_v1 = vsel %vm293_vm1, %v1219_v63, %v1210_v17  ;;  %1814 = vset.pattern.permute.xlu0 %v1946_v42  ;;  %1779 = vmatpush3.msra.mxu0 %v1302_v48  ;;  %v1555_v63 = vld [vmem:[%s2688_s6 + $0x50] sm:$0xff] }
 0x6e6   :  { %v1190_v54 = vsel %vm293_vm1, %v1189_v37, %v1180_v57  ;;  %1780 = vmatprep.subr.mxu0 %v1947_v38  ;;  %v1301_v37 = vld [vmem:[%s2684_s2 + $0x10] sm:$0xff]  ;;  %1782 = vmatprep.mubr.msk.f32.mxu0 %vm1948_vm9, %v1947_v38 }
 0x6e7   :  { %v1192_v23 = vsel %vm296_vm2, %v1190_v54, 0.0  ;;  %1781 = vmatpush3.msra.mxu0 %v1301_v37  ;;  %1593 = vmatprep.subr.mxu1 %v1560_v21 }
 0x6e8   :  { %1193 = vadd.xlane.f32.xlu1 %v1192_v23  ;;  %1785 = vmatprep.subr.mxu0 %v1947_v38 }
 0x6e9   :  { %1594 = vmatpush1.msra.mxu1 %v1559_v41 }
 0x6ea   :  { %1595 = vmatprep.subr.mxu1 %v1558_v28 }
 0x76d   :  { %v612_v24 = vpop.xlane.xlu0 %611 }
 0x76e   :  { %v613_v59 = vadd.f32 1.0, %v612_v24  ;;  %v641_v60 = vadd.f32 1e-12, %v612_v24 }
 0x770   :  { %1864 = vrcp.f32 %v613_v59  ;;  %v1295_v59 = vld [vmem:[%s2684_s2 + $0x8] sm:$0xff] }
 0x771   :  { %v1194_v55 = vpop.xlane.xlu1 %1193 }
 0x772   :  { %v1195_v50 = vadd.f32 1.0, %v1194_v55  ;;  %v1223_v58 = vadd.f32 1e-12, %v1194_v55 }
 0x774   :  { %1866 = vrcp.f32 %v1195_v50  ;;  %v1462_v50 = vld [vmem:[%s2686_s4 + $0x18] sm:$0xff] }
 0x775   :  { %1868 = vrsqrt.f32 %v641_v60 }
 0x776   :  { %1870 = vrsqrt.f32 %v1223_v58  ;;  %v1461_v58 = vld [vmem:[%s2686_s4 + $0x10] sm:$0xff] }
 0x77d   :  { %v1865_v0 = vpop.eup %1864 }
 0x77e   :  { %v615_v2 = vmul.f32 %v1865_v0, %v612_v24  ;;  %v1557_v0 = vld [vmem:[%s2688_s6 + $0x60] sm:$0xff] }
 0x77f   :  { %1596 = vmatpush1.msra.mxu1 %v1557_v0 }
 0x780   :  { %v640_v52 = vmul.f32 %v638_v29, %v615_v2  ;;  %v1556_v2 = vld [vmem:[%s2688_s6 + $0x58] sm:$0xff] }
 0x781   :  { %v1867_v4 = vpop.eup %1866  ;;  %1597 = vmatprep.subr.mxu1 %v1556_v2 }
 0x782   :  { %v1869_v16 = vpop.eup %1868  ;;  %v1197_v36 = vmul.f32 %v1867_v4, %v1194_v55  ;;  %v1554_v4 = vld [vmem:[%s2688_s6 + $0x48] sm:$0xff]  ;;  %1598 = vmatpush1.msra.mxu1 %v1555_v63 }
 0x783   :  { %v2564_v45 = vmul.f32 %v1869_v16, %v640_v52  ;;  %v1871_v30 = vpop.eup %1870  ;;  %v1553_v52 = vld [vmem:[%s2688_s6 + $0x40] sm:$0xff]  ;;  %1599 = vmatprep.subr.mxu1 %v1554_v4  ;;  %v1551_v16 = vld [vmem:[%s2688_s6 + $0x30] sm:$0xff] }
 0x784   :  { %v1222_v12 = vmul.f32 %v1220_v1, %v1197_v36  ;;  %1600 = vmatpush1.msra.mxu1 %v1553_v52  ;;  %v1550_v36 = vld [vmem:[%s2688_s6 + $0x28] sm:$0xff] }
 0x785   :  { %v1253_v5 = vmul.f32 %v2564_v45, %v2564_v45  ;;  %v651_v40 = vrot.slane %v2564_v45, %v650_v61 }
 0x786   :  { %v2569_v46 = vmul.f32 %v1871_v30, %v1222_v12  ;;  %v1762_v30 = vld [vmem:[%s2685_s3] ss:$0 sm:$0xff] }
 0x787   :  { %v1254_v7 = vsel %vm296_vm2, %v1253_v5, 0.0  ;;  %v652_v14 = vcombine.high %v651_v40, %v651_v40  ;;  %v659_v9 = vrot.slane %v651_v40, %v650_v61 }
 0x788   :  { %1255 = vadd.xlane.f32.xlu0 %v1254_v7  ;;  %v1257_v62 = vmul.f32 %v2569_v46, %v2569_v46  ;;  %v1233_v17 = vrot.slane %v2569_v46, %v650_v61 }
 0x789   :  { %v666_v56 = vrot.slane %v652_v14, %v650_v61  ;;  %670 = vst.msk [vmem:[#allocation2] sm:$0x1] %vm669_vm4, %v659_v9  ;;  %v1549_v14 = vld [vmem:[%s2688_s6 + $0x20] sm:$0xff]  ;;  %v1548_v9 = vld [vmem:[%s2688_s6 + $0x18] sm:$0xff] }
 0x78a   :  { %v1258_v15 = vsel %vm296_vm2, %v1257_v62, 0.0  ;;  %v1234_v8 = vcombine.high %v1233_v17, %v1233_v17  ;;  %v1241_v47 = vrot.slane %v1233_v17, %v650_v61  ;;  %v1547_v62 = vld [vmem:[%s2688_s6 + $0x10] sm:$0xff]  ;;  %v1546_v17 = vld [vmem:[%s2688_s6 + $0x8] sm:$0xff] }
 0x78b   :  { %1259 = vadd.xlane.f32.xlu1 %v1258_v15  ;;  %671 = vst.msk [vmem:[#allocation2 + $0x2] sm:$0x1] %vm669_vm4, %v666_v56  ;;  %v1545_v56 = vld [vmem:[%s2688_s6] sm:$0xff] }
 0x78c   :  { %v1248_v19 = vrot.slane %v1234_v8, %v650_v61  ;;  %1251 = vst.msk [vmem:[#allocation2 + $0x1] sm:$0x1] %vm669_vm4, %v1241_v47  ;;  %v1552_v61 = vld [vmem:[%s2688_s6 + $0x38] sm:$0xff]  ;;  %v1763_v15 = vld [vmem:[%s2687_s5] ss:$0 sm:$0xff] }
 0x78d   :  { %1601 = vmatprep.subr.mxu1 %v1552_v61 }
 0x78e   :  { %1252 = vst.msk [vmem:[#allocation2 + $0x3] sm:$0x1] %vm669_vm4, %v1248_v19  ;;  %1602 = vmatpush1.msra.mxu1 %v1551_v16 }
 0x78f   :  { %1603 = vmatprep.subr.mxu1 %v1550_v36 }
 0x790   :  { %1604 = vmatpush1.msra.mxu1 %v1549_v14 }
 0x791   :  { %1605 = vmatprep.subr.mxu1 %v1548_v9 }
 0x792   :  { %1606 = vmatpush1.msra.mxu1 %v1547_v62 }
 0x793   :  { %1607 = vmatprep.subr.mxu1 %v1546_v17 }
 0x794   :  { %1608 = vmatpush1.msra.mxu1 %v1545_v56 }
 0x811   :  { %v1256_v25 = vpop.xlane.xlu0 %1255 }
 0x814   :  { %v1260_v6 = vpop.xlane.xlu1 %1259 }
 0x815   :  { %v1262_v32 = vsel %vm1261_vm5, %v1256_v25, %v1260_v6 }
 0x816   :  { %v1264_v34 = vsel %vm1263_vm6, %v1262_v32, -inf }
 0x817   :  { %1265 = vmax.xlane.f32.xlu0 %v1264_v34 }
 0x8a0   :  { %v1266_v20 = vpop.xlane.xlu0 %1265 }
 0x8a1   :  { %vm1267_vm7 = vcmp.ge.f32.partialorder %v1262_v32, %v1266_v20 }
 0x8a2   :  { %v1268_v39 = vsel %vm1267_vm7, %v2376_v10, 2 }
 0x8a3   :  { %v1269_v27 = vsel %vm1263_vm6, %v1268_v39, 2147483647 }
 0x8a4   :  { %v1271_v53 = vshra.s32 %v1269_v27, 16  ;;  %v1270_v26 = vand.u32 65535, %v1269_v27 }
 0x8a6   :  { %v1273_v44 = vcvt.s32.f32 %v1271_v53  ;;  %v1272_v35 = vcvt.s32.f32 %v1270_v26 }
 0x8a8   :  { %1274 = vmin.xlane.f32.xlu1 %v1273_v44 }
 0x931   :  { %v1275_v29 = vpop.xlane.xlu1 %1274 }
 0x932   :  { %vm1276_vm8 = vcmp.eq.f32.partialorder %v1273_v44, %v1275_v29  ;;  %v1281_v43 = vcvt.f32.s32 %v1275_v29 }
 0x933   :  { %v1277_v3 = vsel %vm1276_vm8, %v1272_v35, inf }
 0x934   :  { %1278 = vmin.xlane.f32.xlu0 %v1277_v3  ;;  %v1282_v51 = vshll.u32 %v1281_v43, 16 }
 0x9bd   :  { %v1279_v49 = vpop.xlane.xlu0 %1278 }
 0x9be   :  { %v1280_v22 = vcvt.f32.s32 %v1279_v49 }
 0x9c0   :  { %v1283_v57 = vadd.s32 %v1282_v51, %v1280_v22 }
 0x9c2   :  { %vm1284_vm10 = vcmp.eq.s32.totalorder %v2376_v10, %v1283_v57  ;;  %v1294_v10 = vld [vmem:[%s2684_s2] sm:$0xff] }
 0x9c3   :  { %v1759_v54 = vsel %vm1284_vm10, 1.0, %v1947_v38 }
 0x9c4   :  { %1290 = vperm.xlu0 %1814, %v1759_v54   ;;  %1287 = vst.msk [vmem:[#allocation6] sm:$0x3] %vm1263_vm6, %v1759_v54  ;;  %1297 = vperm.xlu1 %1813, %v1759_v54  }
 0x9c8   :  { %1815 = vset.pattern.permute.xlu0 %v1945_v11 }
 0xa3f   :  { %v1298_v23 = vpop.permute.xlu1 %1297  ;;  %v1291_v60 = vpop.permute.xlu0 %1290 }
 0xa40   :  { %v1300_v24 = vmul.f32 %v1298_v23, %v2569_v46  ;;  %v1293_v55 = vmul.f32 %v1291_v60, %v2564_v45 }
 0xa42   :  { %1783 = vmatmul.mubr.msk.f32.vlgmr.msra.gmra.mxu0 %vm1303_vm11, %v1300_v24 }
 0xa43   :  { %1786 = vmatpush3.msra.mxu0 %v1295_v59  ;;  %1789 = vmatprep.mubr.msk.f32.mxu0 %vm1948_vm9, %v1947_v38 }
 0xa44   :  { %1787 = vmatprep.subr.mxu0 %v1947_v38 }
 0xa45   :  { %1788 = vmatpush3.msra.mxu0 %v1294_v10 }
 0xa46   :  { %1790 = vmatmul.mubr.msk.f32.vlgmr.msra.gmra.mxu0 %vm1303_vm11, %v1293_v55  ;;  %1792 = vmatprep.subr.mxu0 %v1947_v38 }
 0xa47   :  { %1800 = vmatprep.mubr.msk.f32.mxu0 %vm1948_vm9, %v1947_v38  ;;  %1793 = vmatpush3.msra.mxu0 %v1462_v50 }
 0xa48   :  { %1794 = vmatprep.subr.mxu0 %v1947_v38 }
 0xa49   :  { %1795 = vmatpush3.msra.mxu0 %v1461_v58 }
 0xa4a   :  { %1796 = vmatprep.subr.mxu0 %v1947_v38 }
 0xa4b   :  { %1797 = vmatpush3.msra.mxu0 %v1460_v18 }
 0xa4c   :  { %1798 = vmatprep.subr.mxu0 %v1947_v38 }
 0xa4d   :  { %1799 = vmatpush3.msra.mxu0 %v1459_v33 }
 0xb02   :  { %v1373_v1 = vpop.f32.mrf.mxu0 }
 0xb04   :  { %v1784_v45 = vpop.f32.mrf.mxu0 }
 0xb06   :  { %v1446_v12 = vpop.f32.mrf.mxu0 }
 0xb07   :  { %v1447_v5 = vadd.f32 %v1446_v12, %v1373_v1 }
 0xb08   :  { %v1791_v40 = vpop.f32.mrf.mxu0 }
 0xb09   :  { %v1457_v46 = vadd.f32 %v1762_v30, %v1447_v5 }
 0xb0b   :  { %v1458_v7 = vmax.f32 %v1457_v46, 0.0 }
 0xb0d   :  { %1801 = vmatmul.mubr.msk.f32.vlgmr.msra.gmra.mxu0 %vm1470_vm12, %v1458_v7 }
 0xbcd   :  { %v1540_v8 = vpop.f32.mrf.mxu0 }
 0xbce   :  { %v1541_v47 = vadd.f32 %v1763_v15, %v1540_v8 }
 0xbcf   :  { %v1802_v19 = vpop.f32.mrf.mxu0 }
 0xbd0   :  { %v1544_v25 = vmax.f32 %v1541_v47, 0.0 }
 0xbd2   :  { %1765 = vmatmul.mubr.msk.f32.vlgmr.msra.gmra.mxu1 %vm1573_vm13, %v1544_v25 }
 0xbd3   :  { %1891 = shalt.err (!%p1888_p4)
}
 0xbd4   :  { %s1950_s6 = smov 32   ;;  %s1951_s25 = smov 2   ;;  %v1561_v6 = vld [vmem:[%s2689_s7] sm:$0x3] }
 0xbd5   :  { %1681 = dma.vmem_to_hbm [thread:$0]  %s1676_s23, 64, %s2690_s8, [#allocation3], %s1950_s6, %s1950_s6, %s1951_s25   ;;  %v1566_v32 = vrot.slane %v1561_v6, %v2031_v13  ;;  %v1570_v34 = vrot.slane %v1561_v6, %v2418_v31 }
 0xbd6   :  { %s1952_s7 = smov [#allocation4]   ;;  %s1953_s29 = smov [#allocation6]  }
 0xbd7   :  { %s1688_s8 = sshll.u32 %s1952_s7, 4  ;;  %s1698_s30 = sshll.u32 %s1953_s29, 4  ;;  %s1689_s8 = int_to_ptr.vmem [resolvable:$true] %s1688_s8  ;;  %s1699_s30 = int_to_ptr.vmem [resolvable:$true] %s1698_s30 }
 0xbd8   :  { %s1900_s2 = scalar_lea.vmem %s1689_s8, 64  ;;  %p1905_p6 = scmp.lt.s32.totalorder %s1689_s8, %s1689_s8 }
 0xbd9   :  { %p1901_p5 = scmp.ne.s32.totalorder %s1689_s8, %s1900_s2  ;;  %p1906_p7 = scmp.lt.s32.totalorder %s1900_s2, %s1900_s2 }
 0xbdb   :  { %p1907_p8 = por %p1906_p7, %p1905_p6 }
 0xbdd   :  { %p1908_p9 = pnand %p1907_p8, %p1901_p5 }
 0xc92   :  { %v1643_v20 = vpop.f32.mrf.mxu1 }
 0xc93   :  { %v1644_v39 = vadd.f32 %v1643_v20, %v1566_v32 }
 0xc94   :  { %v1645_v27 = vpop.f32.mrf.mxu1 }
 0xc95   :  { %v1648_v53 = vsub.f32 0.0, %v1644_v39  ;;  %v1646_v44 = vadd.f32 %v1645_v27, %v1570_v34 }
 0xc97   :  { %v1650_v26 = vmul.f32 1.442695, %v1648_v53  ;;  %v1649_v29 = vsub.f32 0.0, %v1646_v44 }
 0xc99   :  { %1872 = vpow2.f32 %v1650_v26  ;;  %v1652_v35 = vmul.f32 1.442695, %v1649_v29 }
 0xc9b   :  { %1874 = vpow2.f32 %v1652_v35 }
 0xca6   :  { %v1873_v3 = vpop.eup %1872 }
 0xca7   :  { %v1654_v11 = vadd.f32 1.0, %v1873_v3 }
 0xca8   :  { %v1875_v42 = vpop.eup %1874 }
 0xca9   :  { %v1655_v38 = vadd.f32 1.0, %v1875_v42  ;;  %1876 = vrcp.f32 %v1654_v11 }
 0xcab   :  { %1878 = vrcp.f32 %v1655_v38 }
 0xcb6   :  { %v1877_v13 = vpop.eup %1876 }
 0xcb8   :  { %v1879_v31 = vpop.eup %1878 }
 0xcb9   :  { %v1660_v48 = vcombine.low %v1877_v13, %v1879_v31 }
 0xcbb   :  { %1766 = vst.sshfl [vmem:[#allocation4] sm:$0x33 pattern:$0x76325410] %v1660_v48 }
 0xcbc   :  { %1911 = shalt.err (!%p1908_p9)
}
 0xcbd   :  { %1691 = dma.vmem_to_hbm [thread:$0]  %s1689_s8, 64, %s2691_s9, [#allocation5]  }
 0xcbe   :  { %s1920_s13 = scalar_lea.vmem %s1699_s30, 32  ;;  %p1925_p11 = scmp.lt.s32.totalorder %s1699_s30, %s1699_s30 }
 0xcbf   :  { %p1921_p10 = scmp.ne.s32.totalorder %s1699_s30, %s1920_s13  ;;  %p1926_p12 = scmp.lt.s32.totalorder %s1920_s13, %s1920_s13 }
 0xcc1   :  { %p1927_p13 = por %p1926_p12, %p1925_p11 }
 0xcc3   :  { %p1928_p0 = pnand %p1927_p13, %p1921_p10 }
 0xcc5   :  { %1931 = shalt.err (!%p1928_p0)
}
 0xcc6   :  { %1701 = dma.vmem_to_hbm [thread:$0]  %s1699_s30, 32, %s2692_s10, [#allocation5]  }
 0xcc7   :  { %1940 = dma.done.wait [#allocation3], 64  }
 0xcc8   :  { %1941 = vsyncadd [#allocation3], 4294967232 }
 0xcc9   :  { %1942 = dma.done.wait [#allocation5], 96  }
 0xcca   :  { %1943 = vsyncadd [#allocation5], 4294967200 }
 0xccb   :  { %1711 = vsyncpa [#allocation3], 1 }
 0xccc   :  { %1712 = vsyncpa [#allocation5], 1 }

</bundles_post_ra>
